<compile_context>
chip_gen: v7x
topology: tpu7x:2x2x1
jax: 0.10.0
libtpu: 0.0.40
codegen_flags: <defaults>
</compile_context>

<pallas_src>
import jax
import jax.numpy as jnp
from jax import lax
from jax.experimental import pallas as pl
from jax.experimental.pallas import tpu as pltpu

N_EMBED = 384      # n_embed in the PyTorch module
HEAD_SIZE = 64
BLOCK_SIZE = 512   # causal-mask max length (tril buffer in the module)
NEG_BIG = -1e30    # finite "-inf": diagonal always unmasked, exp() -> 0 exactly


def head_kernel(x_ref, wqkv_ref, o_ref, k_scr, v_scr):
    # x_ref:    (TQ, C)     bf16 rows [qi*TQ, (qi+1)*TQ) of this batch element
    # wqkv_ref: (C, 3H)     bf16 fused [key | query | value] weights (resident)
    # o_ref:    (TQ, H)     f32 output rows of this query tile
    # k_scr:    (n_q, TQ, H) bf16 per-tile K, persists across the q-tile axis
    # v_scr:    (n_q, TQ, H) bf16 per-tile V, persists across the q-tile axis
    qi = pl.program_id(1)
    TQ, C = x_ref.shape
    H = o_ref.shape[1]

    # ---- incremental QKV projection for this tile's rows (bf16 MXU) --------
    kqv = jnp.dot(x_ref[...], wqkv_ref[...],
                  preferred_element_type=jnp.float32)              # (TQ, 3H)
    k_tile = kqv[:, 0:H].astype(jnp.bfloat16)                      # (TQ, H)
    v_tile = kqv[:, 2 * H:3 * H].astype(jnp.bfloat16)              # (TQ, H)
    k_scr[qi] = k_tile
    v_scr[qi] = v_tile
    scale = jnp.float32(C ** -0.5)        # module scales by n_embed**-0.5
    q = (kqv[:, H:2 * H] * scale).astype(jnp.bfloat16)             # (TQ, H)

    # q @ k^T contracting over H (MXU transposed-RHS mode; no k.T materialized)
    dn = (((1,), (1,)), ((), ()))

    # ---- diagonal key block: the only one that needs the causal mask -------
    s = lax.dot_general(q, k_tile, dn,
                        preferred_element_type=jnp.float32)        # (TQ, TQ)
    rows = lax.broadcasted_iota(jnp.int32, (TQ, 1), 0)   # local idx; row0 cancels
    cols = lax.broadcasted_iota(jnp.int32, (1, TQ), 1)
    s = jnp.where(rows >= cols, s, jnp.float32(NEG_BIG))
    m = jnp.max(s, axis=-1, keepdims=True)                         # (TQ, 1)
    p = jnp.exp(s - m)
    l = jnp.sum(p, axis=-1, keepdims=True)                         # (TQ, 1)
    acc = jnp.dot(p.astype(jnp.bfloat16), v_tile,
                  preferred_element_type=jnp.float32)              # (TQ, H)

    # ---- earlier key blocks: fully unmasked, flash-style online softmax ----
    def body(kv, carry):
        m_i, l_i, acc_i = carry
        s_b = lax.dot_general(q, k_scr[kv], dn,
                              preferred_element_type=jnp.float32)  # (TQ, TK)
        m_new = jnp.maximum(m_i, jnp.max(s_b, axis=-1, keepdims=True))
        alpha = jnp.exp(m_i - m_new)
        p_b = jnp.exp(s_b - m_new)
        l_new = alpha * l_i + jnp.sum(p_b, axis=-1, keepdims=True)
        acc_new = alpha * acc_i + jnp.dot(p_b.astype(jnp.bfloat16), v_scr[kv],
                                          preferred_element_type=jnp.float32)
        return m_new, l_new, acc_new

    m, l, acc = lax.fori_loop(0, qi, body, (m, l, acc))

    # Exact reciprocal: only (TQ, 1) values, keeps parity with the reference.
    out = acc * pl.reciprocal(l, approx=False)

    # Dropout on attention weights: eval mode => identity.
    o_ref[...] = out.astype(o_ref.dtype)


def head_forward(x, w_key, w_query, w_value):
    """x: (B, T, C) float32; w_*: (head_size, n_embed) like nn.Linear.weight."""
    B, T, C = x.shape
    H = w_key.shape[0]
    assert C == w_key.shape[1] == w_query.shape[1] == w_value.shape[1]
    assert T <= BLOCK_SIZE
    assert T % 8 == 0, "T must be a multiple of 8 for TPU tiling"

    TQ = 128 if T % 128 == 0 else T
    n_q = T // TQ

    # Fused [key | query | value] weight, pre-transposed to (C, 3H), bf16 MXU.
    w_qkv = jnp.concatenate([w_key.T, w_query.T, w_value.T],
                            axis=1).astype(jnp.bfloat16)
    x_bf = x.astype(jnp.bfloat16)

    cost = pl.CostEstimate(
        flops=2 * B * H * (3 * T * C + T * (T + TQ)),
        transcendentals=B * T * (T + TQ) // 2,
        bytes_accessed=2 * (B * T * C + C * 3 * H) + 4 * B * T * H,
    )

    return pl.pallas_call(
        head_kernel,
        out_shape=jax.ShapeDtypeStruct((B, T, H), x.dtype),
        grid_spec=pltpu.PrefetchScalarGridSpec(
            num_scalar_prefetch=0,
            grid=(B, n_q),
            in_specs=[
                # Only this tile's rows of x: small, uniform per-step DMA that
                # pipelines against compute (no serialized full-sequence step).
                pl.BlockSpec((pl.Squeezed(), TQ, C), lambda b, q: (b, q, 0)),
                # Weights constant across the grid -> loaded once, resident.
                pl.BlockSpec((C, 3 * H), lambda b, q: (0, 0)),
            ],
            out_specs=pl.BlockSpec((pl.Squeezed(), TQ, H),
                                   lambda b, q: (b, q, 0)),
            scratch_shapes=[
                pltpu.VMEM((n_q, TQ, H), jnp.bfloat16),   # K tiles (carried)
                pltpu.VMEM((n_q, TQ, H), jnp.bfloat16),   # V tiles (carried)
            ],
        ),
        compiler_params=pltpu.CompilerParams(
            # batch axis independent; q-tile axis carries the K/V scratch.
            dimension_semantics=("parallel", "arbitrary"),
        ),
        cost_estimate=cost,
    )(x_bf, w_qkv)


def head_reference(x, w_key, w_query, w_value):
    B, T, C = x.shape
    k = x @ w_key.T
    q = x @ w_query.T
    v = x @ w_value.T
    wei = (q @ jnp.swapaxes(k, -2, -1)) * (C ** -0.5)
    mask = jnp.tril(jnp.ones((T, T), dtype=bool))
    wei = jnp.where(mask, wei, -jnp.inf)
    wei = jax.nn.softmax(wei, axis=-1)
    return wei @ v


if __name__ == "__main__":
    key = jax.random.PRNGKey(0)
    k_x, k_wk, k_wq, k_wv = jax.random.split(key, 4)

    B, T, C, H = 2, 256, N_EMBED, HEAD_SIZE   # 2 q-tiles -> exercises tiling

    x = jax.random.normal(k_x, (B, T, C), dtype=jnp.float32)
    # nn.Linear(n_embed, head_size, bias=False) weight shape: (head_size, n_embed)
    bound = 1.0 / (C ** 0.5)
    w_key = jax.random.uniform(k_wk, (H, C), jnp.float32, -bound, bound)
    w_query = jax.random.uniform(k_wq, (H, C), jnp.float32, -bound, bound)
    w_value = jax.random.uniform(k_wv, (H, C), jnp.float32, -bound, bound)

    out = head_forward(x, w_key, w_query, w_value)
    out = jax.block_until_ready(out)

    ref = head_reference(x, w_key, w_query, w_value)
    assert out.shape == (B, T, H)
    # Tolerance accounts for bf16 matmul operands (f32 accumulation / softmax).
    assert jnp.allclose(out, ref, atol=2e-2, rtol=2e-2), "mismatch vs reference"

    print("KERNEL_OK")
</pallas_src>

<mosaic_0001>
module attributes {stable_mosaic.version = 11 : i64} {
  func.func @head_kernel(%arg0: i32, %arg1: i32, %arg2: memref<1x128x384xbf16, #tpu.memory_space<vmem>>, %arg3: memref<384x192xbf16, #tpu.memory_space<vmem>>, %arg4: memref<1x128x64xf32, #tpu.memory_space<vmem>>, %arg5: memref<2x128x64xbf16, #tpu.memory_space<vmem>>, %arg6: memref<2x128x64xbf16, #tpu.memory_space<vmem>>) attributes {dimension_semantics = [#tpu.dimension_semantics<parallel>, #tpu.dimension_semantics<arbitrary>], iteration_bounds = array<i64: 2, 2>, scalar_prefetch = 0 : i64, scratch_operands = 2 : i64, tpu.core_type = #tpu.core_type<tc>, window_params = [{transform_indices = @transform_0, window_bounds = array<i64: 1, 128, 384>}, {pipeline_mode = #tpu.pipeline_mode<synchronous>, transform_indices = @transform_1, window_bounds = array<i64: 384, 192>}, {transform_indices = @transform_2, window_bounds = array<i64: 1, 128, 64>}]} {
    %c0 = arith.constant 0 : index
    %c0_0 = arith.constant 0 : index
    %c0_1 = arith.constant 0 : index
    %0 = vector.load %arg2[%c0, %c0_0, %c0_1] : memref<1x128x384xbf16, #tpu.memory_space<vmem>>, vector<1x128x384xbf16>
    %1 = vector.shape_cast %0 : vector<1x128x384xbf16> to vector<128x384xbf16>
    %c0_2 = arith.constant 0 : index
    %c0_3 = arith.constant 0 : index
    %2 = vector.load %arg3[%c0_2, %c0_3] : memref<384x192xbf16, #tpu.memory_space<vmem>>, vector<384x192xbf16>
    %cst = arith.constant dense<0.000000e+00> : vector<128x192xf32>
    %3 = tpu.matmul %1, %2, %cst {dimension_numbers = #tpu.dot_dimension_numbers<[1], [0], [0], [1], [0, 0, 1, 1], [], []>} : vector<128x384xbf16>, vector<384x192xbf16>, vector<128x192xf32> -> vector<128x192xf32>
    %4 = vector.extract_strided_slice %3 {offsets = [0, 0], sizes = [128, 64], strides = [1, 1]} : vector<128x192xf32> to vector<128x64xf32>
    %5 = arith.truncf %4 : vector<128x64xf32> to vector<128x64xbf16>
    %6 = vector.extract_strided_slice %3 {offsets = [0, 128], sizes = [128, 64], strides = [1, 1]} : vector<128x192xf32> to vector<128x64xf32>
    %7 = arith.truncf %6 : vector<128x64xf32> to vector<128x64xbf16>
    %8 = arith.index_cast %arg1 : i32 to index
    %c0_4 = arith.constant 0 : index
    %c0_5 = arith.constant 0 : index
    %9 = vector.load %arg5[%8, %c0_4, %c0_5] : memref<2x128x64xbf16, #tpu.memory_space<vmem>>, vector<1x128x64xbf16>
    %10 = vector.shape_cast %9 : vector<1x128x64xbf16> to vector<128x64xbf16>
    %11 = vector.shape_cast %5 : vector<128x64xbf16> to vector<1x128x64xbf16>
    tpu.vector_store %arg5[%8, %c0_4, %c0_5], %11 {strides = array<i32>} : memref<2x128x64xbf16, #tpu.memory_space<vmem>>, vector<1x128x64xbf16>,
    %12 = arith.index_cast %arg1 : i32 to index
    %c0_6 = arith.constant 0 : index
    %c0_7 = arith.constant 0 : index
    %13 = vector.load %arg6[%12, %c0_6, %c0_7] : memref<2x128x64xbf16, #tpu.memory_space<vmem>>, vector<1x128x64xbf16>
    %14 = vector.shape_cast %13 : vector<1x128x64xbf16> to vector<128x64xbf16>
    %15 = vector.shape_cast %7 : vector<128x64xbf16> to vector<1x128x64xbf16>
    tpu.vector_store %arg6[%12, %c0_6, %c0_7], %15 {strides = array<i32>} : memref<2x128x64xbf16, #tpu.memory_space<vmem>>, vector<1x128x64xbf16>,
    %16 = vector.extract_strided_slice %3 {offsets = [0, 64], sizes = [128, 64], strides = [1, 1]} : vector<128x192xf32> to vector<128x64xf32>
    %cst_8 = arith.constant 0.0510310382 : f32
    %17 = vector.broadcast %cst_8 : f32 to vector<128x64xf32>
    %18 = arith.mulf %16, %17 : vector<128x64xf32>
    %19 = arith.truncf %18 : vector<128x64xf32> to vector<128x64xbf16>
    %cst_9 = arith.constant dense<0.000000e+00> : vector<128x128xf32>
    %20 = tpu.matmul %19, %5, %cst_9 {dimension_numbers = #tpu.dot_dimension_numbers<[1], [1], [0], [0], [0, 0, 1, 0], [], []>} : vector<128x64xbf16>, vector<128x64xbf16>, vector<128x128xf32> -> vector<128x128xf32>
    %21 = tpu.iota {dimensions = array<i32: 0>} : vector<128x1xi32>
    %22 = tpu.iota {dimensions = array<i32: 1>} : vector<1x128xi32>
    %23 = vector.broadcast %21 : vector<128x1xi32> to vector<128x128xi32>
    %24 = vector.broadcast %22 : vector<1x128xi32> to vector<128x128xi32>
    %25 = arith.cmpi sge, %23, %24 : vector<128x128xi32>
    %cst_10 = arith.constant -1.000000e+30 : f32
    %26 = vector.broadcast %cst_10 : f32 to vector<128x128xf32>
    %27 = arith.select %25, %20, %26 : vector<128x128xi1>, vector<128x128xf32>
    %cst_11 = arith.constant dense<0xFF800000> : vector<128xf32>
    %28 = vector.multi_reduction <maximumf>, %27, %cst_11 [1] : vector<128x128xf32> to vector<128xf32>
    %29 = vector.shape_cast %28 : vector<128xf32> to vector<128x1xf32>
    %30 = vector.broadcast %29 : vector<128x1xf32> to vector<128x128xf32>
    %31 = arith.subf %27, %30 : vector<128x128xf32>
    %32 = math.exp %31 : vector<128x128xf32>
    %cst_12 = arith.constant dense<0.000000e+00> : vector<128xf32>
    %33 = vector.multi_reduction <add>, %32, %cst_12 [1] : vector<128x128xf32> to vector<128xf32>
    %34 = vector.shape_cast %33 : vector<128xf32> to vector<128x1xf32>
    %35 = arith.truncf %32 : vector<128x128xf32> to vector<128x128xbf16>
    %cst_13 = arith.constant dense<0.000000e+00> : vector<128x64xf32>
    %36 = tpu.matmul %35, %7, %cst_13 {dimension_numbers = #tpu.dot_dimension_numbers<[1], [0], [0], [1], [0, 0, 1, 1], [], []>} : vector<128x128xbf16>, vector<128x64xbf16>, vector<128x64xf32> -> vector<128x64xf32>
    %c0_i32 = arith.constant 0 : i32
    %37 = arith.subi %arg1, %c0_i32 : i32
    %38 = arith.addi %c0_i32, %37 : i32
    %c1_i32 = arith.constant 1 : i32
    %39:3 = scf.for %arg7 = %c0_i32 to %38 step %c1_i32 iter_args(%arg8 = %29, %arg9 = %34, %arg10 = %36) -> (vector<128x1xf32>, vector<128x1xf32>, vector<128x64xf32>)  : i32 {
      %46 = arith.index_cast %arg7 : i32 to index
      %c0_17 = arith.constant 0 : index
      %c0_18 = arith.constant 0 : index
      %47 = vector.load %arg5[%46, %c0_17, %c0_18] : memref<2x128x64xbf16, #tpu.memory_space<vmem>>, vector<1x128x64xbf16>
      %48 = vector.shape_cast %47 : vector<1x128x64xbf16> to vector<128x64xbf16>
      %cst_19 = arith.constant dense<0.000000e+00> : vector<128x128xf32>
      %49 = tpu.matmul %19, %48, %cst_19 {dimension_numbers = #tpu.dot_dimension_numbers<[1], [1], [0], [0], [0, 0, 1, 0], [], []>} : vector<128x64xbf16>, vector<128x64xbf16>, vector<128x128xf32> -> vector<128x128xf32>
      %cst_20 = arith.constant dense<0xFF800000> : vector<128xf32>
      %50 = vector.multi_reduction <maximumf>, %49, %cst_20 [1] : vector<128x128xf32> to vector<128xf32>
      %51 = vector.shape_cast %50 : vector<128xf32> to vector<128x1xf32>
      %52 = arith.maximumf %arg8, %51 : vector<128x1xf32>
      %53 = arith.subf %arg8, %52 : vector<128x1xf32>
      %54 = math.exp %53 : vector<128x1xf32>
      %55 = vector.broadcast %52 : vector<128x1xf32> to vector<128x128xf32>
      %56 = arith.subf %49, %55 : vector<128x128xf32>
      %57 = math.exp %56 : vector<128x128xf32>
      %58 = arith.mulf %54, %arg9 : vector<128x1xf32>
      %cst_21 = arith.constant dense<0.000000e+00> : vector<128xf32>
      %59 = vector.multi_reduction <add>, %57, %cst_21 [1] : vector<128x128xf32> to vector<128xf32>
      %60 = vector.shape_cast %59 : vector<128xf32> to vector<128x1xf32>
      %61 = arith.addf %58, %60 : vector<128x1xf32>
      %62 = vector.broadcast %54 : vector<128x1xf32> to vector<128x64xf32>
      %63 = arith.mulf %62, %arg10 : vector<128x64xf32>
      %64 = arith.truncf %57 : vector<128x128xf32> to vector<128x128xbf16>
      %65 = arith.index_cast %arg7 : i32 to index
      %c0_22 = arith.constant 0 : index
      %c0_23 = arith.constant 0 : index
      %66 = vector.load %arg6[%65, %c0_22, %c0_23] : memref<2x128x64xbf16, #tpu.memory_space<vmem>>, vector<1x128x64xbf16>
      %67 = vector.shape_cast %66 : vector<1x128x64xbf16> to vector<128x64xbf16>
      %cst_24 = arith.constant dense<0.000000e+00> : vector<128x64xf32>
      %68 = tpu.matmul %64, %67, %cst_24 {dimension_numbers = #tpu.dot_dimension_numbers<[1], [0], [0], [1], [0, 0, 1, 1], [], []>} : vector<128x128xbf16>, vector<128x64xbf16>, vector<128x64xf32> -> vector<128x64xf32>
      %69 = arith.addf %63, %68 : vector<128x64xf32>
      scf.yield %52, %61, %69 : vector<128x1xf32>, vector<128x1xf32>, vector<128x64xf32>
    }
    %40 = tpu.reciprocal %39#1 : vector<128x1xf32> -> vector<128x1xf32>
    %41 = vector.broadcast %40 : vector<128x1xf32> to vector<128x64xf32>
    %42 = arith.mulf %39#2, %41 : vector<128x64xf32>
    %c0_14 = arith.constant 0 : index
    %c0_15 = arith.constant 0 : index
    %c0_16 = arith.constant 0 : index
    %43 = vector.load %arg4[%c0_14, %c0_15, %c0_16] : memref<1x128x64xf32, #tpu.memory_space<vmem>>, vector<1x128x64xf32>
    %44 = vector.shape_cast %43 : vector<1x128x64xf32> to vector<128x64xf32>
    %45 = vector.shape_cast %42 : vector<128x64xf32> to vector<1x128x64xf32>
    tpu.vector_store %arg4[%c0_14, %c0_15, %c0_16], %45 {strides = array<i32>} : memref<1x128x64xf32, #tpu.memory_space<vmem>>, vector<1x128x64xf32>,
    return
  }
  func.func @transform_0(%arg0: i32, %arg1: i32) -> (i32, i32, i32) {
    %c0_i32 = arith.constant 0 : i32
    %c0_i32_0 = arith.constant 0 : i32
    return %arg0, %arg1, %c0_i32 : i32, i32, i32
  }
  func.func @transform_1(%arg0: i32, %arg1: i32) -> (i32, i32) {
    %c0_i32 = arith.constant 0 : i32
    %c0_i32_0 = arith.constant 0 : i32
    %c0_i32_1 = arith.constant 0 : i32
    return %c0_i32, %c0_i32_0 : i32, i32
  }
  func.func @transform_2(%arg0: i32, %arg1: i32) -> (i32, i32, i32) {
    %c0_i32 = arith.constant 0 : i32
    %c0_i32_0 = arith.constant 0 : i32
    return %arg0, %arg1, %c0_i32 : i32, i32, i32
  }
}

</mosaic_0001>

<bundles_post_ra>
// kernel: tpu_custom_call.1
= control target key start
LH: loop header
LB: loop body
LE: loop exit
PB: predicated region body
PF: predicated region fallthrough
CT: control target
= control target key end

     0   :  { %7 = vsyncpa [#allocation5], 0  ;;  %s6067_s0 = inlined_call_operand.hbm [shape: bf16[2,256,384], index: 0, kind: input, shape index: {}]   ;;  %s6068_s1 = inlined_call_operand.vmem [shape: bf16[384,192], index: 1, kind: input, shape index: {}]   ;;  %s6069_s2 = inlined_call_operand.vmem [shape: f32[2,256,64], index: 2, kind: output, shape index: {}]  }
   0x1   :  { %9 = vsyncpa [#allocation5 + $0x1], 0  ;;  %s4304_s9 = smov 0   ;;  %s4306_s10 = smov 0  }
   0x2   :  { %s4308_s11 = smov 0   ;;  %s4310_s12 = smov 0  }
   0x3   :  { %s4312_s13 = smov 0   ;;  %s4314_s14 = smov 0  }
   0x4   :  { %s4316_s15 = smov 0   ;;  %s4318_s16 = smov 0  }
   0x5 LB: > { %s2211_s17 = sadd.s32 4294967295, %s3958_s16   ;;  %s24_s18 = sadd.s32 1, %s3950_s14  ;;  %s3958_s16 = sphi %s4318_s16, %s15_s16   ;;  %s3954_s15 = sphi %s4316_s15, %s6401_s15   ;;  %s3950_s14 = sphi %s4314_s14, %s6400_s14   ;;  %s3946_s13 = sphi %s4312_s13, %s6399_s13   ;;  %s3942_s12 = sphi %s4310_s12, %s6398_s12   ;;  %s3938_s11 = sphi %s4308_s11, %s6397_s11   ;;  %s3934_s10 = sphi %s4306_s10, %s6396_s10   ;;  %s3930_s9 = sphi %s4304_s9, %s6395_s9  }
   0x6   : > { %p25_p0 = scmp.ge.s32.totalorder %s24_s18, 2  ;;  %s27_s19 = sadd.s32 1, %s3954_s15 }
   0x7   : > { %s36_s20 = sadd.s32 1, %s3938_s11  ;;  %p43_p1 = scmp.ne.s32.totalorder %s3938_s11, %s3934_s10 }
   0x8   : > { %s6403_s18 = smov (%p25_p0, %s24_s18), 0  ;;  %s6405_s19 = smov (!%p25_p0, %s27_s19), %s3954_s15 }
   0x9   : > { %s32_s21 = ssub.s32 %s3950_s14, %s6403_s18  ;;  %p44_p2 = scmp.eq.s32.totalorder %s3958_s16, 0 }
   0xa   : > { %p29_p3 = scmp.ge.s32.totalorder %s6405_s19, 2  ;;  %p49_p4 = scmp.ne.s32.totalorder %s3934_s10, %s3930_s9 }
   0xb   : > { %p45_p5 = por %p44_p2, %p43_p1  ;;  %p50_p6 = scmp.eq.s32.totalorder %s2211_s17, 0 }
   0xc   : > { %s6407_s19 = smov (%p29_p3, %s6405_s19), 0  ;;  %p2589_p8 = scmp.lt.s32.totalorder %s3958_s16, 4 }
   0xd   : > { %p4357_p7 = por %p50_p6, %p49_p4  ;;  %s31_s23 = ssub.s32 %s3954_s15, %s6407_s19 }
   0xe   : > { %s33_s24 = sor.u32 %s32_s21, %s31_s23  ;;  %s125_s25 = sand.u32 1, %s3938_s11  }
   0xf   : > { %p34_p9 = scmp.eq.s32.totalorder %s33_s24, 0  ;;  %s2579_s26 = smul.u32 192, %s125_s25 }
  0x10   : > { %p4365_p10 = pnand %p2589_p8, %p45_p5  ;;  %s2580_s29 = smul.u32 48, %s3950_s14 }
  0x11   : > { %s4370_s28 = scalar_select %p34_p9, %s3938_s11, %s36_s20  }
  0x12   : > { %s2581_s30 = smul.u32 96, %s3954_s15  ;;  %s129_s3 = scalar_lea.vmem [#allocation4], %s2579_s26 }
  0x13   : > { %s139_s4 = sshll.u32 %s129_s3, 4  ;;  %s4382_s17 = scalar_lea.sflag [#allocation5], %s125_s25  ;;  %s4374_s4 = int_to_ptr.vmem [resolvable:$true] %s139_s4 }
  0x14   : > { %s136_s5 = sadd.s32 %s2581_s30, %s2580_s29  ;;  %p3540_p13 = pneg %p4365_p10 }
  0x15   : > { %s2217_s6 = sshll.u32 %s136_s5, 6  ;;  %s3543_s24 = scalar_lea.hbm %s6067_s0, 12288 }
  0x16   : > { %s4379_s9 = scalar_lea.hbm %s6067_s0, %s2217_s6 }
  0x17   : > { %s3538_s20 = scalar_lea.hbm %s4379_s9, 3072  ;;  %p3544_p2 = scmp.lt.u32.totalorder %s4379_s9, %s6067_s0 }
  0x18   : > { %p3539_p12 = scmp.ne.s32.totalorder %s4379_s9, %s3538_s20  ;;  %p3545_p3 = scmp.lt.u32.totalorder %s3543_s24, %s3538_s20 }
  0x19   : > { %p3547_p5 = scmp.lt.u32.totalorder %s3538_s20, %s4379_s9 }
  0x1a   : > { %p3541_p0 = pnand %p3540_p13, %p3539_p12  ;;  %p3546_p4 = por %p3545_p3, %p3544_p2 }
  0x1c   : > { %p3542_p1 = pneg %p3541_p0  ;;  %p3548_p6 = por %p3547_p5, %p3546_p4 }
  0x1e   : > { %p3549_p8 = pnand %p3548_p6, %p3542_p1 }
  0x20   : > { %3552 = shalt.err (!%p3549_p8)
}
  0x21   : > { %s3553_s25 = scalar_lea.vmem %s4374_s4, 3072  ;;  %s4284_s30 = smov [#allocation4]  }
  0x22   : > { %p3554_p9 = scmp.ne.s32.totalorder %s4374_s4, %s3553_s25  ;;  %s3558_s3 = sshll.u32 %s4284_s30, 4  ;;  %s3559_s3 = int_to_ptr.vmem [resolvable:$false] %s3558_s3 }
  0x23   : > { %s3560_s5 = scalar_lea.vmem %s3559_s3, 6144  ;;  %p3561_p11 = scmp.lt.s32.totalorder %s4374_s4, %s3559_s3 }
  0x24   : > { %p3556_p12 = pnand %p3554_p9, %p3540_p13  ;;  %p3562_p2 = scmp.lt.s32.totalorder %s3560_s5, %s3553_s25 }
  0x26   : > { %p3557_p0 = pneg %p3556_p12  ;;  %p3563_p3 = por %p3562_p2, %p3561_p11 }
  0x28   : > { %p3564_p4 = pnand %p3563_p3, %p3557_p0 }
  0x2a   : > { %3567 = shalt.err (!%p3564_p4)
}
  0x2b   : > { %s4285_s6 = smov 192   ;;  %s4286_s7 = smov 12  }
  0x2c   : > { %2588 = dma.hbm_to_vmem [thread:$0]  (!%p4365_p10), %s4379_s9, 3072, %s4374_s4, %s4382_s17, %s4285_s6, %s4285_s6, %s4286_s7  }
  0x2d   : > { %p147_p13 = scmp.lt.s32.totalorder %s3958_s16, 5  ;;  %p6116_p1 = scmp.ge.s32.totalorder %s3958_s16, 1 }
  0x2f   : > { %p148_p5 = pnand %p6116_p1, %p147_p13 }
  0x31   : > { %151 = sbr.rel (%p148_p5) target bundleno = 1839 (0x72f), region = 28 }
  0x38   : > { %s153_s8 = sand.u32 1, %s3934_s10  }
  0x39   : > { %s2582_s20 = smul.u32 192, %s153_s8  ;;  %s154_s21 = scalar_lea.sflag [#allocation5], %s153_s8 }
  0x3b   : > { %s4414_s23 = scalar_lea.vmem [#allocation4], %s2582_s20 }
  0x3c   : > { %3925 = dma.done.wait (%p4357_p7), %s154_s21, 3072  }
  0x3d   : > { %3927 = vsyncadd (%p4357_p7), %s154_s21, 4294964224  ;;  %s2219_s27 = sshll.u32 %s3942_s12, 4  ;;  %p184_p10 = scmp.lt.s32.totalorder %s3946_s13, 1  ;;  %v4287_v0 = vmov 0   ;;  %v3306_v1 = vld [vmem:[%s6068_s1 + $0x4] ss:$8 sps:$4 sm:$0xff]  }
  0x3e   : > { %p186_p11 = scmp.lt.s32.totalorder %s2219_s27, 31  ;;  %787 = vmatprep.mubr.bf16.mxu1 %v4287_v0  ;;  %v3308_v2 = vld [vmem:[%s6068_s1] ss:$8 sps:$4 sm:$0xff]   ;;  %642 = vmatprep.subr.bf16.mxu0 %v3306_v1  ;;  %v3309_v3 = vld [vmem:[%s6068_s1 + $0x14] ss:$8 sps:$4 sm:$0xff]   ;;  %vm887_vm0 = vcmask 523264  }
  0x3f   : > { %s6409_s13 = smov (!%p184_p10, %s3946_s13), 1  ;;  %643 = vmatpush1.bf16.msra.mxu0 %v3308_v2  ;;  %v3311_v4 = vld [vmem:[%s6068_s1 + $0x10] ss:$8 sps:$4 sm:$0xff]   ;;  %v3312_v5 = vld [vmem:[%s6068_s1 + $0x24] ss:$8 sps:$4 sm:$0xff]   ;;  %p2305_p7 = scmp.le.s32.totalorder %s3942_s12, 0 }
  0x40   : > { %s6411_s27 = smov (!%p186_p11, %s2219_s27), 31  ;;  %s2220_s4 = sshll.u32 %s6409_s13, 5  ;;  %644 = vmatprep.subr.bf16.mxu0 %v3309_v3  ;;  %v3314_v6 = vld [vmem:[%s6068_s1 + $0x20] ss:$8 sps:$4 sm:$0xff]   ;;  %v3315_v7 = vld [vmem:[%s6068_s1 + $0x34] ss:$8 sps:$4 sm:$0xff]  }
  0x41   : > { %s189_s9 = sadd.s32 %s2220_s4, %s6411_s27  ;;  %v3317_v8 = vld [vmem:[%s6068_s1 + $0x30] ss:$8 sps:$4 sm:$0xff]   ;;  %v3330_v9 = vld [vmem:[%s6068_s1 + $0x104] ss:$8 sps:$4 sm:$0xff]   ;;  %v3332_v10 = vld [vmem:[%s6068_s1 + $0x100] ss:$8 sps:$4 sm:$0xff]  }
  0x42   : > { %s2221_s17 = sshll.u32 %s189_s9, 3  ;;  %v3318_v11 = vld [vmem:[%s6068_s1 + $0x44] ss:$8 sps:$4 sm:$0xff]   ;;  %755 = vmatprep.subr.bf16.mxu1 %v3330_v9  ;;  %v3336_v12 = vld [vmem:[%s6068_s1 + $0x114] ss:$8 sps:$4 sm:$0xff]   ;;  %s2319_s27 = sshll.u32 %s3942_s12, 6 }
  0x43   : > { %s4427_s29 = scalar_lea.vmem %s6069_s2, %s2221_s17  ;;  %645 = vmatpush1.bf16.msra.mxu0 %v3311_v4  ;;  %756 = vmatpush1.bf16.msra.mxu1 %v3332_v10  ;;  %v3338_v13 = vld [vmem:[%s6068_s1 + $0x110] ss:$8 sps:$4 sm:$0xff]   ;;  %v3320_v14 = vld [vmem:[%s6068_s1 + $0x40] ss:$8 sps:$4 sm:$0xff]   ;;  %v3321_v15 = vld [vmem:[%s6068_s1 + $0x54] ss:$8 sps:$4 sm:$0xff]  }
  0x44   : > { %646 = vmatprep.subr.bf16.mxu0 %v3312_v5  ;;  %757 = vmatprep.subr.bf16.mxu1 %v3336_v12  ;;  %v3342_v16 = vld [vmem:[%s6068_s1 + $0x124] ss:$8 sps:$4 sm:$0xff]   ;;  %v3344_v17 = vld [vmem:[%s6068_s1 + $0x120] ss:$8 sps:$4 sm:$0xff]   ;;  %v3323_v18 = vld [vmem:[%s6068_s1 + $0x50] ss:$8 sps:$4 sm:$0xff]  }
  0x45   : > { %v3348_v19 = vld [vmem:[%s6068_s1 + $0x134] ss:$8 sps:$4 sm:$0xff]   ;;  %v3324_v20 = vld [vmem:[%s6068_s1 + $0x64] ss:$8 sps:$4 sm:$0xff]   ;;  %v3350_v21 = vld [vmem:[%s6068_s1 + $0x130] ss:$8 sps:$4 sm:$0xff]  }
  0x46   : > { %v3326_v22 = vld [vmem:[%s6068_s1 + $0x60] ss:$8 sps:$4 sm:$0xff]   ;;  %v3354_v23 = vld [vmem:[%s6068_s1 + $0x144] ss:$8 sps:$4 sm:$0xff]   ;;  %v3327_v24 = vld [vmem:[%s6068_s1 + $0x74] ss:$8 sps:$4 sm:$0xff]  }
  0x47   : > { %647 = vmatpush1.bf16.msra.mxu0 %v3314_v6  ;;  %758 = vmatpush1.bf16.msra.mxu1 %v3338_v13  ;;  %v3356_v25 = vld [vmem:[%s6068_s1 + $0x140] ss:$8 sps:$4 sm:$0xff]   ;;  %v3329_v26 = vld [vmem:[%s6068_s1 + $0x70] ss:$8 sps:$4 sm:$0xff]   ;;  %v3360_v27 = vld [vmem:[%s6068_s1 + $0x154] ss:$8 sps:$4 sm:$0xff]  }
  0x48   : > { %648 = vmatprep.subr.bf16.mxu0 %v3315_v7  ;;  %759 = vmatprep.subr.bf16.mxu1 %v3342_v16  ;;  %v3333_v28 = vld [vmem:[%s6068_s1 + $0x84] ss:$8 sps:$4 sm:$0xff]   ;;  %v3362_v29 = vld [vmem:[%s6068_s1 + $0x150] ss:$8 sps:$4 sm:$0xff]   ;;  %v3335_v30 = vld [vmem:[%s6068_s1 + $0x80] ss:$8 sps:$4 sm:$0xff]  }
  0x49   : > { %v3366_v31 = vld [vmem:[%s6068_s1 + $0x164] ss:$8 sps:$4 sm:$0xff]   ;;  %v3339_v32 = vld [vmem:[%s6068_s1 + $0x94] ss:$8 sps:$4 sm:$0xff]   ;;  %v3341_v33 = vld [vmem:[%s6068_s1 + $0x90] ss:$8 sps:$4 sm:$0xff]  }
  0x4a   : > { %v3368_v34 = vld [vmem:[%s6068_s1 + $0x160] ss:$8 sps:$4 sm:$0xff]   ;;  %v3381_v35 = vld [vmem:[%s4414_s23 + $0x4] ss:$12 sps:$4 sm:$0xff]   ;;  %v3372_v36 = vld [vmem:[%s6068_s1 + $0x174] ss:$8 sps:$4 sm:$0xff]  }
  0x4b   : > { %649 = vmatpush1.bf16.msra.mxu0 %v3317_v8  ;;  %760 = vmatpush1.bf16.msra.mxu1 %v3344_v17  ;;  %v3345_v37 = vld [vmem:[%s6068_s1 + $0xa4] ss:$8 sps:$4 sm:$0xff]   ;;  %v3374_v38 = vld [vmem:[%s6068_s1 + $0x170] ss:$8 sps:$4 sm:$0xff]   ;;  %v3347_v39 = vld [vmem:[%s6068_s1 + $0xa0] ss:$8 sps:$4 sm:$0xff]  }
  0x4c   : > { %650 = vmatprep.subr.bf16.mxu0 %v3318_v11  ;;  %761 = vmatprep.subr.bf16.mxu1 %v3348_v19  ;;  %v3351_v40 = vld [vmem:[%s6068_s1 + $0xb4] ss:$8 sps:$4 sm:$0xff]   ;;  %v3353_v42 = vld [vmem:[%s6068_s1 + $0xb0] ss:$8 sps:$4 sm:$0xff]   ;;  %v3357_v43 = vld [vmem:[%s6068_s1 + $0xc4] ss:$8 sps:$4 sm:$0xff]  }
  0x4d   : > { %674 = vmatprep.mubr.bf16.mxu0 %v3381_v35  ;;  %v3378_v41 = vld [vmem:[%s4414_s23 + $0x8] ss:$12 sps:$4 sm:$0xff]   ;;  %v3382_v46 = vld [vmem:[%s4414_s23 + $0x20] ss:$12 sps:$4 sm:$0xff]   ;;  %v3365_v47 = vld [vmem:[%s6068_s1 + $0xd0] ss:$8 sps:$4 sm:$0xff]  }
  0x4e   : > { %v3359_v44 = vld [vmem:[%s6068_s1 + $0xc0] ss:$8 sps:$4 sm:$0xff]   ;;  %v3363_v45 = vld [vmem:[%s6068_s1 + $0xd4] ss:$8 sps:$4 sm:$0xff]   ;;  %v3369_v48 = vld [vmem:[%s6068_s1 + $0xe4] ss:$8 sps:$4 sm:$0xff]  }
  0x4f   : > { %651 = vmatpush1.bf16.msra.mxu0 %v3320_v14  ;;  %762 = vmatpush1.bf16.msra.mxu1 %v3350_v21  ;;  %v3371_v49 = vld [vmem:[%s6068_s1 + $0xe0] ss:$8 sps:$4 sm:$0xff]   ;;  %v3375_v50 = vld [vmem:[%s6068_s1 + $0xf4] ss:$8 sps:$4 sm:$0xff]   ;;  %v3386_v51 = vld [vmem:[%s4414_s23 + $0x38] ss:$12 sps:$4 sm:$0xff]  }
  0x50   : > { %652 = vmatprep.subr.bf16.mxu0 %v3321_v15  ;;  %763 = vmatprep.subr.bf16.mxu1 %v3354_v23  ;;  %v3377_v52 = vld [vmem:[%s6068_s1 + $0xf0] ss:$8 sps:$4 sm:$0xff]   ;;  %v3379_v53 = vld [vmem:[%s4414_s23] ss:$12 sps:$4 sm:$0xff]   ;;  %v3383_v54 = vld [vmem:[%s4414_s23 + $0x1c] ss:$12 sps:$4 sm:$0xff]  }
  0x51   : > { %v3390_v55 = vld [vmem:[%s4414_s23 + $0x50] ss:$12 sps:$4 sm:$0xff]   ;;  %v3385_v56 = vld [vmem:[%s4414_s23 + $0x18] ss:$12 sps:$4 sm:$0xff]   ;;  %v3387_v57 = vld [vmem:[%s4414_s23 + $0x34] ss:$12 sps:$4 sm:$0xff]  }
  0x52   : > { %v3394_v58 = vld [vmem:[%s4414_s23 + $0x68] ss:$12 sps:$4 sm:$0xff]   ;;  %v3389_v59 = vld [vmem:[%s4414_s23 + $0x30] ss:$12 sps:$4 sm:$0xff]   ;;  %v3391_v60 = vld [vmem:[%s4414_s23 + $0x4c] ss:$12 sps:$4 sm:$0xff]  }
  0x53   : > { %653 = vmatpush1.bf16.msra.mxu0 %v3323_v18  ;;  %764 = vmatpush1.bf16.msra.mxu1 %v3356_v25  ;;  %v3398_v61 = vld [vmem:[%s4414_s23 + $0x80] ss:$12 sps:$4 sm:$0xff]   ;;  %v3393_v62 = vld [vmem:[%s4414_s23 + $0x48] ss:$12 sps:$4 sm:$0xff]   ;;  %v3395_v63 = vld [vmem:[%s4414_s23 + $0x64] ss:$12 sps:$4 sm:$0xff]  }
  0x54   : > { %654 = vmatprep.subr.bf16.mxu0 %v3324_v20  ;;  %765 = vmatprep.subr.bf16.mxu1 %v3360_v27  ;;  %v3402_v1 = vld [vmem:[%s4414_s23 + $0x98] ss:$12 sps:$4 sm:$0xff]   ;;  %v3397_v2 = vld [vmem:[%s4414_s23 + $0x60] ss:$12 sps:$4 sm:$0xff]   ;;  %v3399_v3 = vld [vmem:[%s4414_s23 + $0x7c] ss:$12 sps:$4 sm:$0xff]  }
  0x55   : > { %v3406_v4 = vld [vmem:[%s4414_s23 + $0xb0] ss:$12 sps:$4 sm:$0xff]   ;;  %v3401_v5 = vld [vmem:[%s4414_s23 + $0x78] ss:$12 sps:$4 sm:$0xff]   ;;  %v3403_v6 = vld [vmem:[%s4414_s23 + $0x94] ss:$12 sps:$4 sm:$0xff]  }
  0x56   : > { %v3405_v7 = vld [vmem:[%s4414_s23 + $0x90] ss:$12 sps:$4 sm:$0xff]   ;;  %v3407_v8 = vld [vmem:[%s4414_s23 + $0xac] ss:$12 sps:$4 sm:$0xff]   ;;  %v3409_v9 = vld [vmem:[%s4414_s23 + $0xa8] ss:$12 sps:$4 sm:$0xff]  }
  0x57   : > { %655 = vmatpush1.bf16.msra.mxu0 %v3326_v22  ;;  %766 = vmatpush1.bf16.msra.mxu1 %v3362_v29  ;;  %s4617_s23 = scalar_lea.vmem [#allocation2], %s2319_s27  ;;  %s4623_s4 = scalar_lea.vmem [#allocation3], %s2319_s27 }
  0x58   : > { %656 = vmatprep.subr.bf16.mxu0 %v3327_v24  ;;  %767 = vmatprep.subr.bf16.mxu1 %v3366_v31  ;;  %s4288_s9 = smov 64  }
  0x5b   : > { %657 = vmatpush1.bf16.msra.mxu0 %v3329_v26  ;;  %768 = vmatpush1.bf16.msra.mxu1 %v3368_v34 }
  0x5c   : > { %658 = vmatprep.subr.bf16.mxu0 %v3333_v28  ;;  %769 = vmatprep.subr.bf16.mxu1 %v3372_v36 }
  0x5f   : > { %659 = vmatpush1.bf16.msra.mxu0 %v3335_v30  ;;  %770 = vmatpush1.bf16.msra.mxu1 %v3374_v38 }
  0x60   : > { %660 = vmatprep.subr.bf16.mxu0 %v3339_v32 }
  0x62   : > { %788 = vmatmul.mubr.bf16.vlgmr.msra.gmra.mrb[0].mxu1 %v3378_v41 }
  0x63   : > { %661 = vmatpush1.bf16.msra.mxu0 %v3341_v33  ;;  %797 = vmatprep.mubr.bf16.mxu1 %v4287_v0 }
  0x64   : > { %662 = vmatprep.subr.bf16.mxu0 %v3345_v37 }
  0x67   : > { %663 = vmatpush1.bf16.msra.mxu0 %v3347_v39 }
  0x68   : > { %664 = vmatprep.subr.bf16.mxu0 %v3351_v40 }
  0x6a   : > { %798 = vmatmul.mubr.bf16.gmra.mrb[4].mxu1 %v3382_v46 }
  0x6b   : > { %665 = vmatpush1.bf16.msra.mxu0 %v3353_v42  ;;  %807 = vmatprep.mubr.bf16.mxu1 %v4287_v0 }
  0x6c   : > { %666 = vmatprep.subr.bf16.mxu0 %v3357_v43 }
  0x6f   : > { %667 = vmatpush1.bf16.msra.mxu0 %v3359_v44 }
  0x70   : > { %668 = vmatprep.subr.bf16.mxu0 %v3363_v45 }
  0x72   : > { %808 = vmatmul.mubr.bf16.gmra.mrb[8].mxu1 %v3386_v51 }
  0x73   : > { %669 = vmatpush1.bf16.msra.mxu0 %v3365_v47  ;;  %817 = vmatprep.mubr.bf16.mxu1 %v4287_v0 }
  0x74   : > { %670 = vmatprep.subr.bf16.mxu0 %v3369_v48 }
  0x77   : > { %671 = vmatpush1.bf16.msra.mxu0 %v3371_v49 }
  0x78   : > { %672 = vmatprep.subr.bf16.mxu0 %v3375_v50 }
  0x7a   : > { %818 = vmatmul.mubr.bf16.gmra.mrb[12].mxu1 %v3390_v55 }
  0x7b   : > { %673 = vmatpush1.bf16.msra.mxu0 %v3377_v52  ;;  %827 = vmatprep.mubr.bf16.mxu1 %v4287_v0 }
  0x7e   : > { %675 = vmatmul.mubr.bf16.vlgmr.msra.gmra.mrb[0].mxu0 %v3379_v53 }
  0x7f   : > { %684 = vmatprep.mubr.bf16.mxu0 %v3383_v54 }
  0x82   : > { %828 = vmatmul.mubr.bf16.gmra.mrb[16].mxu1 %v3394_v58 }
  0x83   : > { %837 = vmatprep.mubr.bf16.mxu1 %v4287_v0 }
  0x86   : > { %685 = vmatmul.mubr.bf16.gmra.mrb[4].mxu0 %v3385_v56 }
  0x87   : > { %694 = vmatprep.mubr.bf16.mxu0 %v3387_v57 }
  0x8a   : > { %838 = vmatmul.mubr.bf16.gmra.mrb[20].mxu1 %v3398_v61 }
  0x8b   : > { %847 = vmatprep.mubr.bf16.mxu1 %v4287_v0 }
  0x8e   : > { %695 = vmatmul.mubr.bf16.gmra.mrb[8].mxu0 %v3389_v59 }
  0x8f   : > { %704 = vmatprep.mubr.bf16.mxu0 %v3391_v60 }
  0x92   : > { %848 = vmatmul.mubr.bf16.gmra.mrb[24].mxu1 %v3402_v1 }
  0x93   : > { %857 = vmatprep.mubr.bf16.mxu1 %v4287_v0 }
  0x96   : > { %705 = vmatmul.mubr.bf16.gmra.mrb[12].mxu0 %v3393_v62 }
  0x97   : > { %714 = vmatprep.mubr.bf16.mxu0 %v3395_v63 }
  0x9a   : > { %858 = vmatmul.mubr.bf16.gmra.mrb[28].mxu1 %v3406_v4 }
  0x9e   : > { %715 = vmatmul.mubr.bf16.gmra.mrb[16].mxu0 %v3397_v2 }
  0x9f   : > { %724 = vmatprep.mubr.bf16.mxu0 %v3399_v3 }
  0xa6   : > { %725 = vmatmul.mubr.bf16.gmra.mrb[20].mxu0 %v3401_v5 }
  0xa7   : > { %734 = vmatprep.mubr.bf16.mxu0 %v3403_v6 }
  0xae   : > { %735 = vmatmul.mubr.bf16.gmra.mrb[24].mxu0 %v3405_v7 }
  0xaf   : > { %744 = vmatprep.mubr.bf16.mxu0 %v3407_v8 }
  0xb6   : > { %745 = vmatmul.mubr.bf16.gmra.mrb[28].mxu0 %v3409_v9 }
 0x135   : > { %v789_v10 = vpop.f32.mrb[0].mxu1 }
 0x136   : > { %v791_v11 = vpop.f32.mrb[1].mxu1 }
 0x137   : > { %v793_v12 = vpop.f32.mrb[2].mxu1 }
 0x138   : > { %v795_v0 = vpop.f32.mrb[3].mxu1 }
 0x13d   : > { %v799_v13 = vpop.f32.mrb[4].mxu1 }
 0x13e   : > { %v801_v14 = vpop.f32.mrb[5].mxu1 }
 0x13f   : > { %v803_v15 = vpop.f32.mrb[6].mxu1 }
 0x140   : > { %v805_v16 = vpop.f32.mrb[7].mxu1 }
 0x145   : > { %v809_v17 = vpop.f32.mrb[8].mxu1 }
 0x146   : > { %v811_v18 = vpop.f32.mrb[9].mxu1 }
 0x147   : > { %v813_v19 = vpop.f32.mrb[10].mxu1 }
 0x148   : > { %v4604_v20 = vpop.f32.mrb[11].mxu1 }
 0x14d   : > { %v4607_v28 = vpop.f32.mrb[12].mxu1 }
 0x14e   : > { %v4609_v30 = vpop.f32.mrb[13].mxu1 }
 0x14f   : > { %v4611_v34 = vpop.f32.mrb[14].mxu1 }
 0x150   : > { %v4615_v36 = vpop.f32.mrb[15].mxu1 }
 0x151   : > { %v676_v21 = vpop.f32.mrb[0].mxu0 }
 0x152   : > { %v790_v22 = vadd.f32 %v789_v10, %v676_v21  ;;  %v678_v23 = vpop.f32.mrb[1].mxu0 }
 0x153   : > { %v792_v24 = vadd.f32 %v791_v11, %v678_v23  ;;  %v680_v25 = vpop.f32.mrb[2].mxu0 }
 0x154   : > { %v794_v26 = vadd.f32 %v793_v12, %v680_v25  ;;  %v682_v27 = vpop.f32.mrb[3].mxu0  ;;  %v906_v31 = vmul.f32 0.05103104, %v790_v22 }
 0x155   : > { %v796_v29 = vadd.f32 %v795_v0, %v682_v27  ;;  %v4631_v46 = vpop.f32.mrb[16].mxu1 }
 0x156   : > { %v868_v32 = vpack.c.bf16 %v794_v26, %v790_v22  ;;  %v907_v33 = vmul.f32 0.05103104, %v794_v26  ;;  %v4633_v48 = vpop.f32.mrb[17].mxu1 }
 0x157   : > { %v4613_v35 = vpack.c.bf16 %v796_v29, %v792_v24  ;;  %v4635_v52 = vpop.f32.mrb[18].mxu1 }
 0x158   : > { %888 = vst.msk [vmem:[%s4617_s23] sm:$0xff] %vm887_vm0, %v868_v32  ;;  %2563 = vmatprep.subr.msk.bf16.mxu1 %vm887_vm0, %v868_v32  ;;  %v979_v37 = vsel %vm887_vm0, %v868_v32, 0  ;;  %v922_v38 = vpack.c.bf16 %v907_v33, %v906_v31  ;;  %v4639_v54 = vpop.f32.mrb[19].mxu1 }
 0x159   : > { %898 = vst.msk [vmem:[%s4623_s4] sm:$0xff] %vm887_vm0, %v4613_v35  ;;  %v686_v39 = vpop.f32.mrb[4].mxu0  ;;  %2388 = vmatpush3.bf16.xpose.msra.mxu1 %v979_v37  ;;  %2419 = vmatprep.subr.bf16.mxu0 %v4613_v35 }
 0x15a   : > { %v800_v40 = vadd.f32 %v799_v13, %v686_v39  ;;  %938 = vrot.lane.b32.xlu0 %v922_v38, %s4288_s9  ;;  %v688_v41 = vpop.f32.mrb[5].mxu0  ;;  %2420 = vmatpush3.bf16.msra.mxu0 %v4613_v35 }
 0x15b   : > { %v802_v42 = vadd.f32 %v801_v14, %v688_v41  ;;  %v690_v43 = vpop.f32.mrb[6].mxu0 }
 0x15c   : > { %v804_v44 = vadd.f32 %v803_v15, %v690_v43  ;;  %v692_v45 = vpop.f32.mrb[7].mxu0  ;;  %v908_v49 = vmul.f32 0.05103104, %v800_v40 }
 0x15d   : > { %v806_v47 = vadd.f32 %v805_v16, %v692_v45  ;;  %v4651_v1 = vpop.f32.mrb[20].mxu1 }
 0x15e   : > { %v869_v50 = vpack.c.bf16 %v804_v44, %v800_v40  ;;  %v909_v51 = vmul.f32 0.05103104, %v804_v44  ;;  %v4654_v3 = vpop.f32.mrb[21].mxu1 }
 0x15f   : > { %v4637_v53 = vpack.c.bf16 %v806_v47, %v802_v42  ;;  %v4656_v7 = vpop.f32.mrb[22].mxu1 }
 0x160   : > { %889 = vst.msk [vmem:[%s4617_s23 + $0x8] sm:$0xff] %vm887_vm0, %v869_v50  ;;  %2564 = vmatprep.subr.msk.bf16.mxu1 %vm887_vm0, %v869_v50  ;;  %v982_v55 = vsel %vm887_vm0, %v869_v50, 0  ;;  %v923_v56 = vpack.c.bf16 %v909_v51, %v908_v49  ;;  %v4660_v9 = vpop.f32.mrb[23].mxu1 }
 0x161   : > { %899 = vst.msk [vmem:[%s4623_s4 + $0x8] sm:$0xff] %vm887_vm0, %v4637_v53  ;;  %v696_v57 = vpop.f32.mrb[8].mxu0  ;;  %2390 = vmatpush3.bf16.xpose.msra.mxu1 %v982_v55  ;;  %2421 = vmatprep.subr.bf16.mxu0 %v4637_v53 }
 0x162   : > { %v810_v58 = vadd.f32 %v809_v17, %v696_v57  ;;  %940 = vrot.lane.b32.xlu0 %v923_v56, %s4288_s9  ;;  %v698_v59 = vpop.f32.mrb[9].mxu0  ;;  %2422 = vmatpush3.bf16.msra.mxu0 %v4637_v53 }
 0x163   : > { %v812_v60 = vadd.f32 %v811_v18, %v698_v59  ;;  %v700_v61 = vpop.f32.mrb[10].mxu0 }
 0x164   : > { %v814_v62 = vadd.f32 %v813_v19, %v700_v61  ;;  %v702_v63 = vpop.f32.mrb[11].mxu0  ;;  %v910_v4 = vmul.f32 0.05103104, %v810_v58 }
 0x165   : > { %v816_v2 = vadd.f32 %v4604_v20, %v702_v63  ;;  %v4675_v18 = vpop.f32.mrb[24].mxu1 }
 0x166   : > { %v870_v5 = vpack.c.bf16 %v814_v62, %v810_v58  ;;  %v911_v6 = vmul.f32 0.05103104, %v814_v62  ;;  %v4678_v20 = vpop.f32.mrb[25].mxu1 }
 0x167   : > { %v4658_v8 = vpack.c.bf16 %v816_v2, %v812_v60  ;;  %v4680_v24 = vpop.f32.mrb[26].mxu1 }
 0x168   : > { %890 = vst.msk [vmem:[%s4617_s23 + $0x10] sm:$0xff] %vm887_vm0, %v870_v5  ;;  %2565 = vmatprep.subr.msk.bf16.mxu1 %vm887_vm0, %v870_v5  ;;  %v985_v10 = vsel %vm887_vm0, %v870_v5, 0  ;;  %v924_v11 = vpack.c.bf16 %v911_v6, %v910_v4  ;;  %v4684_v26 = vpop.f32.mrb[27].mxu1 }
 0x169   : > { %900 = vst.msk [vmem:[%s4623_s4 + $0x10] sm:$0xff] %vm887_vm0, %v4658_v8  ;;  %v706_v12 = vpop.f32.mrb[12].mxu0  ;;  %2392 = vmatpush3.bf16.xpose.msra.mxu1 %v985_v10  ;;  %2423 = vmatprep.subr.bf16.mxu0 %v4658_v8 }
 0x16a   : > { %v820_v0 = vadd.f32 %v4607_v28, %v706_v12  ;;  %942 = vrot.lane.b32.xlu1 %v924_v11, %s4288_s9  ;;  %v708_v13 = vpop.f32.mrb[13].mxu0  ;;  %2424 = vmatpush3.bf16.msra.mxu0 %v4658_v8 }
 0x16b   : > { %v822_v14 = vadd.f32 %v4609_v30, %v708_v13  ;;  %v710_v15 = vpop.f32.mrb[14].mxu0 }
 0x16c   : > { %v824_v16 = vadd.f32 %v4611_v34, %v710_v15  ;;  %v712_v17 = vpop.f32.mrb[15].mxu0  ;;  %v912_v21 = vmul.f32 0.05103104, %v820_v0 }
 0x16d   : > { %v826_v19 = vadd.f32 %v4615_v36, %v712_v17  ;;  %v859_v37 = vpop.f32.mrb[28].mxu1 }
 0x16e   : > { %v871_v22 = vpack.c.bf16 %v824_v16, %v820_v0  ;;  %v913_v23 = vmul.f32 0.05103104, %v824_v16  ;;  %v861_v39 = vpop.f32.mrb[29].mxu1 }
 0x16f   : > { %v4682_v25 = vpack.c.bf16 %v826_v19, %v822_v14  ;;  %v863_v43 = vpop.f32.mrb[30].mxu1 }
 0x170   : > { %891 = vst.msk [vmem:[%s4617_s23 + $0x18] sm:$0xff] %vm887_vm0, %v871_v22  ;;  %2566 = vmatprep.subr.msk.bf16.mxu1 %vm887_vm0, %v871_v22  ;;  %v988_v27 = vsel %vm887_vm0, %v871_v22, 0  ;;  %v925_v28 = vpack.c.bf16 %v913_v23, %v912_v21  ;;  %v865_v45 = vpop.f32.mrb[31].mxu1 }
 0x171   : > { %901 = vst.msk [vmem:[%s4623_s4 + $0x18] sm:$0xff] %vm887_vm0, %v4682_v25  ;;  %v716_v29 = vpop.f32.mrb[16].mxu0  ;;  %2394 = vmatpush3.bf16.xpose.msra.mxu1 %v988_v27  ;;  %2425 = vmatprep.subr.bf16.mxu0 %v4682_v25 }
 0x172   : > { %v830_v30 = vadd.f32 %v4631_v46, %v716_v29  ;;  %944 = vrot.lane.b32.xlu1 %v925_v28, %s4288_s9  ;;  %v718_v31 = vpop.f32.mrb[17].mxu0  ;;  %2426 = vmatpush3.bf16.msra.mxu0 %v4682_v25 }
 0x173   : > { %v832_v32 = vadd.f32 %v4633_v48, %v718_v31  ;;  %v720_v33 = vpop.f32.mrb[18].mxu0 }
 0x174   : > { %v834_v34 = vadd.f32 %v4635_v52, %v720_v33  ;;  %v722_v36 = vpop.f32.mrb[19].mxu0  ;;  %v914_v40 = vmul.f32 0.05103104, %v830_v30  ;;  %v1099_v33 = vlaneseq }
 0x175   : > { %v836_v38 = vadd.f32 %v4639_v54, %v722_v36 }
 0x176   : > { %v872_v41 = vpack.c.bf16 %v834_v34, %v830_v30  ;;  %v915_v42 = vmul.f32 0.05103104, %v834_v34  ;;  %v4790_v34 = vshrl.u32 %v1099_v33, 7 }
 0x177   : > { %v4700_v44 = vpack.c.bf16 %v836_v38, %v832_v32 }
 0x178   : > { %892 = vst.msk [vmem:[%s4617_s23 + $0x20] sm:$0xff] %vm887_vm0, %v872_v41  ;;  %2567 = vmatprep.subr.msk.bf16.mxu1 %vm887_vm0, %v872_v41  ;;  %v991_v46 = vsel %vm887_vm0, %v872_v41, 0  ;;  %v926_v47 = vpack.c.bf16 %v915_v42, %v914_v40  ;;  %v1102_v36 = vadd.s32 16, %v4790_v34  ;;  %v1101_v38 = vadd.s32 8, %v4790_v34 }
 0x179   : > { %902 = vst.msk [vmem:[%s4623_s4 + $0x20] sm:$0xff] %vm887_vm0, %v4700_v44  ;;  %v726_v48 = vpop.f32.mrb[20].mxu0  ;;  %2396 = vmatpush3.bf16.xpose.msra.mxu1 %v991_v46  ;;  %2427 = vmatprep.subr.bf16.mxu0 %v4700_v44 }
 0x17a   : > { %v840_v49 = vadd.f32 %v4651_v1, %v726_v48  ;;  %946 = vrot.lane.b32.xlu0 %v926_v47, %s4288_s9  ;;  %v728_v50 = vpop.f32.mrb[21].mxu0  ;;  %2428 = vmatpush3.bf16.msra.mxu0 %v4700_v44  ;;  %v1106_v48 = vadd.s32 48, %v4790_v34 }
 0x17b   : > { %v842_v51 = vadd.f32 %v4654_v3, %v728_v50  ;;  %v730_v52 = vpop.f32.mrb[22].mxu0  ;;  %v1104_v50 = vadd.s32 32, %v4790_v34 }
 0x17c   : > { %v844_v54 = vadd.f32 %v4656_v7, %v730_v52  ;;  %v732_v55 = vpop.f32.mrb[23].mxu0  ;;  %v916_v57 = vmul.f32 0.05103104, %v840_v49 }
 0x17d   : > { %v846_v56 = vadd.f32 %v4660_v9, %v732_v55 }
 0x17e   : > { %v873_v58 = vpack.c.bf16 %v844_v54, %v840_v49  ;;  %v917_v59 = vmul.f32 0.05103104, %v844_v54  ;;  %v1105_v49 = vadd.s32 40, %v4790_v34 }
 0x17f   : > { %v4716_v60 = vpack.c.bf16 %v846_v56, %v842_v51 }
 0x180   : > { %893 = vst.msk [vmem:[%s4617_s23 + $0x28] sm:$0xff] %vm887_vm0, %v873_v58  ;;  %2568 = vmatprep.subr.msk.bf16.mxu1 %vm887_vm0, %v873_v58  ;;  %v994_v61 = vsel %vm887_vm0, %v873_v58, 0  ;;  %v927_v62 = vpack.c.bf16 %v917_v59, %v916_v57  ;;  %v1110_v59 = vadd.s32 80, %v4790_v34 }
 0x181   : > { %903 = vst.msk [vmem:[%s4623_s4 + $0x28] sm:$0xff] %vm887_vm0, %v4716_v60  ;;  %v736_v63 = vpop.f32.mrb[24].mxu0  ;;  %2398 = vmatpush3.bf16.xpose.msra.mxu1 %v994_v61  ;;  %2429 = vmatprep.subr.bf16.mxu0 %v4716_v60  ;;  %v1111_v61 = vadd.s32 88, %v4790_v34 }
 0x182   : > { %v850_v1 = vadd.f32 %v4675_v18, %v736_v63  ;;  %948 = vrot.lane.b32.xlu1 %v927_v62, %s4288_s9  ;;  %v738_v2 = vpop.f32.mrb[25].mxu0  ;;  %2430 = vmatpush3.bf16.msra.mxu0 %v4716_v60 }
 0x183   : > { %v852_v3 = vadd.f32 %v4678_v20, %v738_v2  ;;  %v740_v4 = vpop.f32.mrb[26].mxu0 }
 0x184   : > { %v854_v5 = vadd.f32 %v4680_v24, %v740_v4  ;;  %v742_v6 = vpop.f32.mrb[27].mxu0  ;;  %v918_v9 = vmul.f32 0.05103104, %v850_v1 }
 0x185   : > { %v856_v7 = vadd.f32 %v4684_v26, %v742_v6 }
 0x186   : > { %v874_v10 = vpack.c.bf16 %v854_v5, %v850_v1  ;;  %v919_v11 = vmul.f32 0.05103104, %v854_v5  ;;  %v1109_v5 = vadd.s32 72, %v4790_v34 }
 0x187   : > { %v882_v12 = vpack.c.bf16 %v856_v7, %v852_v3  ;;  %v1107_v7 = vadd.s32 56, %v4790_v34 }
 0x188   : > { %894 = vst.msk [vmem:[%s4617_s23 + $0x30] sm:$0xff] %vm887_vm0, %v874_v10  ;;  %2569 = vmatprep.subr.msk.bf16.mxu1 %vm887_vm0, %v874_v10  ;;  %v997_v0 = vsel %vm887_vm0, %v874_v10, 0  ;;  %v928_v13 = vpack.c.bf16 %v919_v11, %v918_v9  ;;  %v1112_v10 = vadd.s32 96, %v4790_v34  ;;  %v1113_v11 = vadd.s32 104, %v4790_v34 }
 0x189   : > { %904 = vst.msk [vmem:[%s4623_s4 + $0x30] sm:$0xff] %vm887_vm0, %v882_v12  ;;  %v746_v14 = vpop.f32.mrb[28].mxu0  ;;  %2400 = vmatpush3.bf16.xpose.msra.mxu1 %v997_v0  ;;  %2431 = vmatprep.subr.bf16.mxu0 %v882_v12  ;;  %v1114_v0 = vadd.s32 112, %v4790_v34 }
 0x18a   : > { %v860_v15 = vadd.f32 %v859_v37, %v746_v14  ;;  %950 = vrot.lane.b32.xlu0 %v928_v13, %s4288_s9  ;;  %v748_v16 = vpop.f32.mrb[29].mxu0  ;;  %2432 = vmatpush3.bf16.msra.mxu0 %v882_v12  ;;  %v4793_v37 = vand.u32 127, %v1099_v33 }
 0x18b   : > { %v862_v17 = vadd.f32 %v861_v39, %v748_v16  ;;  %v750_v18 = vpop.f32.mrb[30].mxu0  ;;  %v1103_v39 = vadd.s32 24, %v4790_v34 }
 0x18c   : > { %v864_v19 = vadd.f32 %v863_v43, %v750_v18  ;;  %v752_v20 = vpop.f32.mrb[31].mxu0  ;;  %v920_v22 = vmul.f32 0.05103104, %v860_v15  ;;  %vm1120_vm1 = vcmp.ge.s32.totalorder %v1102_v36, %v4793_v37  ;;  %vm1118_vm2 = vcmp.ge.s32.totalorder %v4790_v34, %v4793_v37 }
 0x18d   : > { %v866_v21 = vadd.f32 %v865_v45, %v752_v20  ;;  %vm1119_vm3 = vcmp.ge.s32.totalorder %v1101_v38, %v4793_v37  ;;  %vm1121_vm4 = vcmp.ge.s32.totalorder %v1103_v39, %v4793_v37  ;;  %vm1124_vm5 = vcmp.ge.s32.totalorder %v1106_v48, %v4793_v37 }
 0x18e   : > { %v875_v23 = vpack.c.bf16 %v864_v19, %v860_v15  ;;  %v921_v24 = vmul.f32 0.05103104, %v864_v19  ;;  %vm1123_vm6 = vcmp.ge.s32.totalorder %v1105_v49, %v4793_v37  ;;  %vm1122_vm7 = vcmp.ge.s32.totalorder %v1104_v50, %v4793_v37 }
 0x18f   : > { %v883_v26 = vpack.c.bf16 %v866_v21, %v862_v17  ;;  %vm1128_vm8 = vcmp.ge.s32.totalorder %v1110_v59, %v4793_v37  ;;  %vm1129_vm10 = vcmp.ge.s32.totalorder %v1111_v61, %v4793_v37  ;;  %vm1127_vm11 = vcmp.ge.s32.totalorder %v1109_v5, %v4793_v37 }
 0x190   : > { %895 = vst.msk [vmem:[%s4617_s23 + $0x38] sm:$0xff] %vm887_vm0, %v875_v23  ;;  %2570 = vmatprep.subr.msk.bf16.mxu1 %vm887_vm0, %v875_v23  ;;  %v1000_v27 = vsel %vm887_vm0, %v875_v23, 0  ;;  %v929_v28 = vpack.c.bf16 %v921_v24, %v920_v22  ;;  %vm1125_vm12 = vcmp.ge.s32.totalorder %v1107_v7, %v4793_v37  ;;  %vm1130_vm13 = vcmp.ge.s32.totalorder %v1112_v10, %v4793_v37 }
 0x191   : > { %905 = vst.msk [vmem:[%s4623_s4 + $0x38] sm:$0xff] %vm887_vm0, %v883_v26  ;;  %2402 = vmatpush3.bf16.xpose.msra.mxu1 %v1000_v27  ;;  %2433 = vmatprep.subr.bf16.mxu0 %v883_v26  ;;  %vm1131_vm14 = vcmp.ge.s32.totalorder %v1113_v11, %v4793_v37  ;;  %v1115_v15 = vadd.s32 120, %v4790_v34  ;;  %vm1132_vm15 = vcmp.ge.s32.totalorder %v1114_v0, %v4793_v37 }
 0x192   : > { %952 = vrot.lane.b32.xlu1 %v929_v28, %s4288_s9  ;;  %2515 = vmatprep.subr.bf16.mxu1 %v4613_v35 }
 0x193   : > { %2434 = vmatpush3.bf16.msra.mxu0 %v883_v26 }
 0x1cc   : > { %v4747_v29 = vpop.permute.xlu0 %938 }
 0x1cd   : > { %6117 = vst [vmem:[#allocation7_spill] sm:$0xff] %v4747_v29  ;;  %2403 = vmatprep.mubr.msk.bf16.mxu1 %vm887_vm0, %v4747_v29 }
 0x1d4   : > { %v4751_v30 = vpop.permute.xlu0 %940 }
 0x1d5   : > { %6118 = vst [vmem:[#allocation8_spill] sm:$0xff] %v4751_v30  ;;  %2404 = vmatmul.mubr.msk.bf16.vlgmr.msra.gmra.mrb[32].mxu1 %vm887_vm0, %v4751_v30 }
 0x1d6   : > { %2523 = vmatpush3.bf16.msra.mxu1 %v4613_v35 }
 0x1d7   : > { %2516 = vmatprep.subr.bf16.mxu1 %v4637_v53 }
 0x1da   : > { %2524 = vmatpush3.bf16.msra.mxu1 %v4637_v53 }
 0x1db   : > { %2517 = vmatprep.subr.bf16.mxu1 %v4658_v8 }
 0x1dc   : > { %v4759_v31 = vpop.permute.xlu1 %942 }
 0x1dd   : > { %6119 = vst [vmem:[#allocation9_spill] sm:$0xff] %v4759_v31  ;;  %2407 = vmatprep.mubr.msk.bf16.mxu1 %vm887_vm0, %v4759_v31 }
 0x1de   : > { %2525 = vmatpush3.bf16.msra.mxu1 %v4658_v8 }
 0x1df   : > { %2518 = vmatprep.subr.bf16.mxu1 %v4682_v25 }
 0x1e2   : > { %2526 = vmatpush3.bf16.msra.mxu1 %v4682_v25 }
 0x1e3   : > { %2519 = vmatprep.subr.bf16.mxu1 %v4700_v44 }
 0x1e4   : > { %v4767_v35 = vpop.permute.xlu1 %944 }
 0x1e5   : > { %6120 = vst [vmem:[#allocation10_spill] sm:$0xff] %v4767_v35  ;;  %2408 = vmatmul.mubr.msk.bf16.gmra.mrb[36].mxu1 %vm887_vm0, %v4767_v35 }
 0x1e6   : > { %2527 = vmatpush3.bf16.msra.mxu1 %v4700_v44 }
 0x1e7   : > { %2520 = vmatprep.subr.bf16.mxu1 %v4716_v60 }
 0x1ea   : > { %2528 = vmatpush3.bf16.msra.mxu1 %v4716_v60  ;;  %v1108_v60 = vadd.s32 64, %v4790_v34 }
 0x1eb   : > { %2521 = vmatprep.subr.bf16.mxu1 %v882_v12 }
 0x1ec   : > { %v4774_v53 = vpop.permute.xlu0 %946  ;;  %vm1126_vm9 = vcmp.ge.s32.totalorder %v1108_v60, %v4793_v37 }
 0x1ed   : > { %6121 = vst [vmem:[#allocation11_spill] sm:$0xff] %v4774_v53  ;;  %2411 = vmatprep.mubr.msk.bf16.mxu1 %vm887_vm0, %v4774_v53 }
 0x1ee   : > { %2529 = vmatpush3.bf16.msra.mxu1 %v882_v12 }
 0x1ef   : > { %2522 = vmatprep.subr.bf16.mxu1 %v883_v26 }
 0x1f2   : > { %2530 = vmatpush3.bf16.msra.mxu1 %v883_v26 }
 0x1f4   : > { %v4778_v8 = vpop.permute.xlu1 %948 }
 0x1f5   : > { %6122 = vst [vmem:[#allocation12_spill] sm:$0xff] %v4778_v8  ;;  %2412 = vmatmul.mubr.msk.bf16.gmra.mrb[40].mxu1 %vm887_vm0, %v4778_v8 }
 0x1fc   : > { %v4782_v25 = vpop.permute.xlu0 %950 }
 0x1fd   : > { %6123 = vst [vmem:[#allocation13_spill] sm:$0xff] %v4782_v25  ;;  %2415 = vmatprep.mubr.msk.bf16.mxu1 %vm887_vm0, %v4782_v25 }
 0x204   : > { %v4786_v32 = vpop.permute.xlu1 %952 }
 0x205   : > { %6124 = vst [vmem:[#allocation14_spill] sm:$0xff] %v4786_v32  ;;  %2416 = vmatmul.mubr.msk.bf16.gmra.mrb[44].mxu1 %vm887_vm0, %v4786_v32 }
 0x2a8   : > { %v2405_v40 = vpop.f32.mrb[32].mxu1 }
 0x2a9   : > { %v1036_v41 = vpop.f32.mrb[33].mxu1  ;;  %v4800_v42 = vsel %vm1120_vm1, %v2405_v40, -1e+30  ;;  %vm1133_vm1 = vcmp.ge.s32.totalorder %v1115_v15, %v4793_v37 }
 0x2aa   : > { %1154 = vmax.xlane.f32.xlu1 %v4800_v42  ;;  %v2406_v43 = vpop.f32.mrb[34].mxu1  ;;  %v4804_v44 = vsel %vm1118_vm2, %v1036_v41, -1e+30 }
 0x2ab   : > { %1150 = vmax.xlane.f32.xlu0 %v4804_v44  ;;  %v1039_v45 = vpop.f32.mrb[35].mxu1  ;;  %v4811_v47 = vsel %vm1121_vm4, %v2406_v43, -1e+30 }
 0x2ac   : > { %v4808_v46 = vsel %vm1119_vm3, %v1039_v45, -1e+30 }
 0x2ae   : > { %1152 = vmax.xlane.f32.xlu1 %v4808_v46 }
 0x2af   : > { %1156 = vmax.xlane.f32.xlu0 %v4811_v47 }
 0x2b8   : > { %v2409_v51 = vpop.f32.mrb[36].mxu1 }
 0x2b9   : > { %v1052_v52 = vpop.f32.mrb[37].mxu1  ;;  %v4818_v54 = vsel %vm1124_vm5, %v2409_v51, -1e+30 }
 0x2ba   : > { %1162 = vmax.xlane.f32.xlu1 %v4818_v54  ;;  %v2410_v55 = vpop.f32.mrb[38].mxu1  ;;  %v4826_v58 = vsel %vm1122_vm7, %v1052_v52, -1e+30 }
 0x2bb   : > { %v1055_v56 = vpop.f32.mrb[39].mxu1  ;;  %v4853_v12 = vsel %vm1125_vm12, %v2410_v55, -1e+30 }
 0x2bc   : > { %v4823_v57 = vsel %vm1123_vm6, %v1055_v56, -1e+30 }
 0x2bd   : > { %1160 = vmax.xlane.f32.xlu0 %v4823_v57 }
 0x2be   : > { %1158 = vmax.xlane.f32.xlu1 %v4826_v58 }
 0x2c8   : > { %v2413_v62 = vpop.f32.mrb[40].mxu1 }
 0x2c9   : > { %v1068_v63 = vpop.f32.mrb[41].mxu1  ;;  %v4834_v1 = vsel %vm1128_vm8, %v2413_v62, -1e+30 }
 0x2ca   : > { %1170 = vmax.xlane.f32.xlu1 %v4834_v1  ;;  %v2414_v2 = vpop.f32.mrb[42].mxu1  ;;  %v4837_v3 = vsel %vm1126_vm9, %v1068_v63, -1e+30 }
 0x2cb   : > { %1166 = vmax.xlane.f32.xlu0 %v4837_v3  ;;  %v1071_v4 = vpop.f32.mrb[43].mxu1  ;;  %v4842_v6 = vsel %vm1129_vm10, %v2414_v2, -1e+30 }
 0x2cc   : > { %v4847_v9 = vsel %vm1127_vm11, %v1071_v4, -1e+30 }
 0x2cf   : > { %1172 = vmax.xlane.f32.xlu0 %v4842_v6 }
 0x2d3   : > { %1168 = vmax.xlane.f32.xlu0 %v4847_v9 }
 0x2d7   : > { %1164 = vmax.xlane.f32.xlu0 %v4853_v12 }
 0x2d8   : > { %v2417_v13 = vpop.f32.mrb[44].mxu1 }
 0x2d9   : > { %v1084_v14 = vpop.f32.mrb[45].mxu1  ;;  %v4868_v20 = vsel %vm1132_vm15, %v2417_v13, -1e+30 }
 0x2da   : > { %v2418_v16 = vpop.f32.mrb[46].mxu1  ;;  %v4860_v17 = vsel %vm1130_vm13, %v1084_v14, -1e+30 }
 0x2db   : > { %1174 = vmax.xlane.f32.xlu1 %v4860_v17  ;;  %v1087_v18 = vpop.f32.mrb[47].mxu1  ;;  %v4871_v21 = vsel %vm1133_vm1, %v2418_v16, -1e+30 }
 0x2dc   : > { %v4864_v19 = vsel %vm1131_vm14, %v1087_v18, -1e+30 }
 0x2dd   : > { %1176 = vmax.xlane.f32.xlu0 %v4864_v19 }
 0x2df   : > { %1178 = vmax.xlane.f32.xlu1 %v4868_v20 }
 0x2e1   : > { %1180 = vmax.xlane.f32.xlu0 %v4871_v21 }
 0x337   : > { %v4874_v22 = vpop.xlane.xlu1 %1154  }
 0x338   : > { %6125 = vst [vmem:[#allocation15_spill] sm:$0xff] %v4874_v22  ;;  %v1184_v23 = vsub.f32 %v4800_v42, %v4874_v22  ;;  %v4878_v24 = vpop.xlane.xlu0 %1150  }
 0x339   : > { %6126 = vst [vmem:[#allocation16_spill] sm:$0xff] %v4878_v24  ;;  %v1182_v26 = vsub.f32 %v4804_v44, %v4878_v24 }
 0x33a   : > { %v1202_v27 = vmul.f32 1.442695, %v1184_v23 }
 0x33b   : > { %v1198_v28 = vmul.f32 1.442695, %v1182_v26  ;;  %v4882_v33 = vpop.xlane.xlu1 %1152  }
 0x33c   : > { %6127 = vst [vmem:[#allocation17_spill] sm:$0xff] %v4882_v33  ;;  %3410 = vpow2.f32 %v1202_v27  ;;  %v1183_v34 = vsub.f32 %v4808_v46, %v4882_v33  ;;  %v4886_v36 = vpop.xlane.xlu0 %1156  }
 0x33d   : > { %6128 = vst [vmem:[#allocation18_spill] sm:$0xff] %v4886_v36  ;;  %v1185_v37 = vsub.f32 %v4811_v47, %v4886_v36  ;;  %3412 = vpow2.f32 %v1198_v28 }
 0x33e   : > { %v1200_v38 = vmul.f32 1.442695, %v1183_v34 }
 0x33f   : > { %v1204_v39 = vmul.f32 1.442695, %v1185_v37 }
 0x340   : > { %3414 = vpow2.f32 %v1200_v38 }
 0x341   : > { %3416 = vpow2.f32 %v1204_v39 }
 0x346   : > { %v3411_v40 = vpop.eup %3410 }
 0x347   : > { %v4890_v41 = vpop.xlane.xlu1 %1162   ;;  %1234 = vadd.xlane.f32.xlu1 %v3411_v40  ;;  %v3413_v43 = vpop.eup %3412 }
 0x348   : > { %6129 = vst [vmem:[#allocation19_spill] sm:$0xff] %v4890_v41  ;;  %v1188_v42 = vsub.f32 %v4818_v54, %v4890_v41 }
 0x34a   : > { %v3415_v44 = vpop.eup %3414  ;;  %v1210_v45 = vmul.f32 1.442695, %v1188_v42  ;;  %v4894_v46 = vpop.xlane.xlu0 %1160  }
 0x34b   : > { %6130 = vst [vmem:[#allocation20_spill] sm:$0xff] %v4894_v46  ;;  %v3417_v48 = vpop.eup %3416  ;;  %v1187_v47 = vsub.f32 %v4823_v57, %v4894_v46  ;;  %v4898_v49 = vpop.xlane.xlu1 %1158   ;;  %1230 = vadd.xlane.f32.xlu1 %v3413_v43  ;;  %v1262_v50 = vpack.c.bf16 %v3415_v44, %v3413_v43 }
 0x34c   : > { %6131 = vst [vmem:[#allocation21_spill] sm:$0xff] %v4898_v49  ;;  %3418 = vpow2.f32 %v1210_v45  ;;  %v1186_v51 = vsub.f32 %v4826_v58, %v4898_v49  ;;  %1236 = vadd.xlane.f32.xlu0 %v3417_v48  ;;  %v1263_v52 = vpack.c.bf16 %v3417_v48, %v3411_v40 }
 0x34d   : > { %v1208_v54 = vmul.f32 1.442695, %v1187_v47  ;;  %2435 = vmatprep.mubr.bf16.mxu0 %v1262_v50 }
 0x34e   : > { %v1206_v55 = vmul.f32 1.442695, %v1186_v51  ;;  %2436 = vmatmul.mubr.bf16.vlgmr.msra.gmra.mrb[32].mxu0 %v1263_v52 }
 0x34f   : > { %3420 = vpow2.f32 %v1208_v54 }
 0x350   : > { %3422 = vpow2.f32 %v1206_v55  ;;  %1232 = vadd.xlane.f32.xlu0 %v3415_v44 }
 0x356   : > { %v3419_v56 = vpop.eup %3418 }
 0x357   : > { %v4902_v59 = vpop.xlane.xlu1 %1170   ;;  %1242 = vadd.xlane.f32.xlu1 %v3419_v56 }
 0x358   : > { %6132 = vst [vmem:[#allocation22_spill] sm:$0xff] %v4902_v59  ;;  %v1192_v57 = vsub.f32 %v4834_v1, %v4902_v59  ;;  %v4906_v60 = vpop.xlane.xlu0 %1166  }
 0x359   : > { %6133 = vst [vmem:[#allocation23_spill] sm:$0xff] %v4906_v60  ;;  %v3421_v61 = vpop.eup %3420  ;;  %v1190_v58 = vsub.f32 %v4837_v3, %v4906_v60 }
 0x35a   : > { %v3423_v62 = vpop.eup %3422  ;;  %v1218_v63 = vmul.f32 1.442695, %v1192_v57 }
 0x35b   : > { %1238 = vadd.xlane.f32.xlu1 %v3423_v62  ;;  %v1264_v2 = vpack.c.bf16 %v3421_v61, %v3423_v62  ;;  %v1214_v4 = vmul.f32 1.442695, %v1190_v58 }
 0x35c   : > { %3424 = vpow2.f32 %v1218_v63  ;;  %v4910_v5 = vpop.xlane.xlu0 %1172  }
 0x35d   : > { %6134 = vst [vmem:[#allocation24_spill] sm:$0xff] %v4910_v5  ;;  %v1193_v7 = vsub.f32 %v4842_v6, %v4910_v5  ;;  %2439 = vmatprep.mubr.bf16.mxu0 %v1264_v2  ;;  %3426 = vpow2.f32 %v1214_v4 }
 0x35f   : > { %v1220_v1 = vmul.f32 1.442695, %v1193_v7 }
 0x360   : > { %v4914_v10 = vpop.xlane.xlu0 %1168  }
 0x361   : > { %6135 = vst [vmem:[#allocation25_spill] sm:$0xff] %v4914_v10  ;;  %v1191_v11 = vsub.f32 %v4847_v9, %v4914_v10  ;;  %3428 = vpow2.f32 %v1220_v1 }
 0x363   : > { %v1216_v3 = vmul.f32 1.442695, %v1191_v11 }
 0x364   : > { %v4918_v0 = vpop.xlane.xlu0 %1164  }
 0x365   : > { %6136 = vst [vmem:[#allocation26_spill] sm:$0xff] %v4918_v0  ;;  %3430 = vpow2.f32 %v1216_v3  ;;  %v1189_v13 = vsub.f32 %v4853_v12, %v4918_v0 }
 0x366   : > { %v3425_v14 = vpop.eup %3424 }
 0x367   : > { %v1212_v15 = vmul.f32 1.442695, %v1189_v13  ;;  %1250 = vadd.xlane.f32.xlu1 %v3425_v14  ;;  %v3427_v18 = vpop.eup %3426 }
 0x368   : > { %v4922_v6 = vpop.xlane.xlu1 %1174  }
 0x369   : > { %6137 = vst [vmem:[#allocation27_spill] sm:$0xff] %v4922_v6  ;;  %3432 = vpow2.f32 %v1212_v15  ;;  %v1194_v16 = vsub.f32 %v4860_v17, %v4922_v6 }
 0x36a   : > { %v4926_v23 = vpop.xlane.xlu0 %1176  }
 0x36b   : > { %6138 = vst [vmem:[#allocation28_spill] sm:$0xff] %v4926_v23  ;;  %v1222_v9 = vmul.f32 1.442695, %v1194_v16  ;;  %v1195_v26 = vsub.f32 %v4864_v19, %v4926_v23  ;;  %1246 = vadd.xlane.f32.xlu1 %v3427_v18  ;;  %v3429_v34 = vpop.eup %3428 }
 0x36c   : > { %v4930_v27 = vpop.xlane.xlu1 %1178   ;;  %v1267_v42 = vpack.c.bf16 %v3429_v34, %v3425_v14 }
 0x36d   : > { %6139 = vst [vmem:[#allocation29_spill] sm:$0xff] %v4930_v27  ;;  %3434 = vpow2.f32 %v1222_v9  ;;  %v1224_v12 = vmul.f32 1.442695, %v1195_v26  ;;  %v1196_v28 = vsub.f32 %v4868_v20, %v4930_v27 }
 0x36e   : > { %v4934_v37 = vpop.xlane.xlu0 %1180  }
 0x36f   : > { %6140 = vst [vmem:[#allocation30_spill] sm:$0xff] %v4934_v37  ;;  %v3431_v38 = vpop.eup %3430  ;;  %3436 = vpow2.f32 %v1224_v12  ;;  %v1226_v17 = vmul.f32 1.442695, %v1196_v28  ;;  %v1197_v39 = vsub.f32 %v4871_v21, %v4934_v37 }
 0x370   : > { %v1266_v40 = vpack.c.bf16 %v3431_v38, %v3427_v18 }
 0x371   : > { %3438 = vpow2.f32 %v1226_v17  ;;  %v1228_v19 = vmul.f32 1.442695, %v1197_v39 }
 0x372   : > { %2443 = vmatprep.mubr.bf16.mxu1 %v1266_v40 }
 0x373   : > { %v3433_v43 = vpop.eup %3432  ;;  %3440 = vpow2.f32 %v1228_v19  ;;  %2444 = vmatmul.mubr.bf16.vlgmr.msra.gmra.mrb[48].mxu1 %v1267_v42 }
 0x374   : > { %1244 = vadd.xlane.f32.xlu0 %v3433_v43  ;;  %v1265_v44 = vpack.c.bf16 %v3433_v43, %v3419_v56 }
 0x376   : > { %2440 = vmatmul.mubr.bf16.gmra.mrb[36].mxu0 %v1265_v44 }
 0x377   : > { %v3435_v20 = vpop.eup %3434 }
 0x378   : > { %1254 = vadd.xlane.f32.xlu1 %v3435_v20  ;;  %1240 = vadd.xlane.f32.xlu0 %v3421_v61 }
 0x379   : > { %v3437_v45 = vpop.eup %3436 }
 0x37a   : > { %v1268_v48 = vpack.c.bf16 %v3437_v45, %v3435_v20 }
 0x37b   : > { %v3439_v47 = vpop.eup %3438 }
 0x37c   : > { %1258 = vadd.xlane.f32.xlu1 %v3439_v47  ;;  %1252 = vadd.xlane.f32.xlu0 %v3429_v34 }
 0x37d   : > { %v3441_v21 = vpop.eup %3440  ;;  %2447 = vmatprep.mubr.bf16.mxu1 %v1268_v48 }
 0x37e   : > { %v1269_v50 = vpack.c.bf16 %v3441_v21, %v3439_v47 }
 0x380   : > { %1248 = vadd.xlane.f32.xlu0 %v3431_v38  ;;  %2448 = vmatmul.mubr.bf16.gmra.mrb[52].mxu1 %v1269_v50 }
 0x384   : > { %1256 = vadd.xlane.f32.xlu0 %v3437_v45 }
 0x388   : > { %1260 = vadd.xlane.f32.xlu0 %v3441_v21 }
 0x3d4   : > { %v4938_v51 = vpop.xlane.xlu1 %1234  }
 0x3d5   : > { %v6170_v23 = vmov %v4938_v51 }
 0x3d8   : > { %v4940_v52 = vpop.xlane.xlu1 %1230  }
 0x3d9   : > { %v4942_v54 = vpop.xlane.xlu0 %1236   ;;  %v6172_v37 = vmov %v4940_v52 }
 0x3da   : > { %v6169_v6 = vmov %v4942_v54 }
 0x3dd   : > { %v4944_v55 = vpop.xlane.xlu0 %1232  }
 0x3de   : > { %v6171_v27 = vmov %v4944_v55 }
 0x3e4   : > { %v4946_v56 = vpop.xlane.xlu1 %1242  }
 0x3e5   : > { %v6166_v10 = vmov %v4946_v56 }
 0x3e8   : > { %v4948_v57 = vpop.xlane.xlu1 %1238  }
 0x3e9   : > { %v6168_v5 = vmov %v4948_v57 }
 0x3f4   : > { %v4950_v61 = vpop.xlane.xlu1 %1250  }
 0x3f5   : > { %v6162_v46 = vmov %v4950_v61 }
 0x3f8   : > { %v4952_v58 = vpop.xlane.xlu1 %1246  }
 0x3f9   : > { %v6164_v0 = vmov %v4952_v58 }
 0x401   : > { %v4954_v62 = vpop.xlane.xlu0 %1244  }
 0x402   : > { %v6165_v60 = vmov %v4954_v62 }
 0x405   : > { %v4956_v63 = vpop.xlane.xlu1 %1254   ;;  %v4958_v2 = vpop.xlane.xlu0 %1240  }
 0x406   : > { %v6160_v36 = vmov %v4956_v63  ;;  %v6167_v59 = vmov %v4958_v2 }
 0x409   : > { %v4960_v4 = vpop.xlane.xlu1 %1258   ;;  %v4962_v7 = vpop.xlane.xlu0 %1252  }
 0x40a   : > { %v6158_v33 = vmov %v4960_v4  ;;  %v6161_v49 = vmov %v4962_v7 }
 0x40d   : > { %v4964_v1 = vpop.xlane.xlu0 %1248  }
 0x40e   : > { %v6163_v41 = vmov %v4964_v1 }
 0x411   : > { %v4966_v11 = vpop.xlane.xlu0 %1256  }
 0x412   : > { %v6159_v22 = vmov %v4966_v11 }
 0x415   : > { %v4968_v3 = vpop.xlane.xlu0 %1260  }
 0x416   : > { %v6157_v24 = vmov %v4968_v3 }
 0x421   : > { %v2437_v13 = vpop.f32.mrb[32].mxu0  }
 0x422   : > { %v4970_v14 = vpop.f32.mrb[33].mxu0   ;;  %v6154_v31 = vmov %v2437_v13 }
 0x423   : > { %v2438_v15 = vpop.f32.mrb[34].mxu0   ;;  %v6156_v29 = vmov %v4970_v14 }
 0x424   : > { %v1307_v16 = vpop.f32.mrb[35].mxu0   ;;  %v6153_v35 = vmov %v2438_v15 }
 0x425   : > { %v6155_v30 = vmov %v1307_v16 }
 0x446   : > { %v2445_v18 = vpop.f32.mrb[48].mxu1  }
 0x447   : > { %v1336_v9 = vpop.f32.mrb[49].mxu1   ;;  %v6146_v47 = vmov %v2445_v18 }
 0x448   : > { %v2446_v26 = vpop.f32.mrb[50].mxu1   ;;  %v6148_v50 = vmov %v1336_v9 }
 0x449   : > { %v2441_v12 = vpop.f32.mrb[36].mxu0   ;;  %v1339_v28 = vpop.f32.mrb[51].mxu1   ;;  %v6145_v48 = vmov %v2446_v26 }
 0x44a   : > { %v1320_v34 = vpop.f32.mrb[37].mxu0   ;;  %v6147_v21 = vmov %v1339_v28  ;;  %v6150_v25 = vmov %v2441_v12 }
 0x44b   : > { %v2442_v38 = vpop.f32.mrb[38].mxu0   ;;  %v6152_v53 = vmov %v1320_v34 }
 0x44c   : > { %v1323_v17 = vpop.f32.mrb[39].mxu0   ;;  %v6149_v32 = vmov %v2442_v38 }
 0x44d   : > { %v6151_v8 = vmov %v1323_v17 }
 0x451   : > { %2077 = sbr.rel (%p2305_p7) target bundleno = 1810 (0x712), region = 73 }
 0x453   : > { %v2449_v39 = vpop.f32.mrb[52].mxu1  }
 0x454   : > { %v1352_v40 = vpop.f32.mrb[53].mxu1   ;;  %v6142_v44 = vmov %v2449_v39 }
 0x455   : > { %v2450_v19 = vpop.f32.mrb[54].mxu1   ;;  %v6144_v45 = vmov %v1352_v40 }
 0x456   : > { %v1355_v42 = vpop.f32.mrb[55].mxu1   ;;  %v6141_v43 = vmov %v2450_v19 }
 0x457   : > { %v6143_v20 = vmov %v1355_v42 }
 0x458   : > { %6173 = vst [vmem:[#allocation31_spill] sm:$0xff] %v2446_v26  ;;  %6174 = vst [vmem:[#allocation32_spill] sm:$0xff] %v2445_v18  ;;  %v6176_v29 = vld [vmem:[#allocation30_spill] sm:$0xff]  ;;  %v6177_v30 = vld [vmem:[#allocation29_spill] sm:$0xff]  ;;  %s5185_s17 = smov 0  }
 0x459   : > { %6175 = vst [vmem:[#allocation33_spill] sm:$0xff] %v1339_v28  ;;  %v6178_v31 = vld [vmem:[#allocation28_spill] sm:$0xff]  ;;  %v6179_v35 = vld [vmem:[#allocation27_spill] sm:$0xff]  ;;  %v6181_v8 = vld [vmem:[#allocation22_spill] sm:$0xff] }
 0x45a   : > { %v6180_v53 = vld [vmem:[#allocation24_spill] sm:$0xff]  ;;  %v6182_v25 = vld [vmem:[#allocation25_spill] sm:$0xff]  ;;  %v6183_v32 = vld [vmem:[#allocation23_spill] sm:$0xff] }
 0x45b   : > { %v6184_v22 = vld [vmem:[#allocation26_spill] sm:$0xff]  ;;  %v6185_v24 = vld [vmem:[#allocation19_spill] sm:$0xff]  ;;  %v6186_v33 = vld [vmem:[#allocation20_spill] sm:$0xff] }
 0x45c   : > { %v6187_v36 = vld [vmem:[#allocation21_spill] sm:$0xff]  ;;  %v6188_v41 = vld [vmem:[#allocation18_spill] sm:$0xff]  ;;  %v6189_v46 = vld [vmem:[#allocation15_spill] sm:$0xff] }
 0x45d   : > { %v6190_v49 = vld [vmem:[#allocation17_spill] sm:$0xff]  ;;  %v6191_v59 = vld [vmem:[#allocation16_spill] sm:$0xff] }
 0x45e LB: >> { %6195 = vst [vmem:[#allocation34_spill] sm:$0xff] %v3962_v19  ;;  %6196 = vst [vmem:[#allocation35_spill] sm:$0xff] %v3966_v39  ;;  %v6216_v60 = vld [vmem:[#allocation7_spill] sm:$0xff]  ;;  %s2321_s24 = sshll.u32 %s4154_s17, 6  ;;  %s1370_s25 = sadd.s32 1, %s4154_s17   ;;  %s4154_s17 = sphi %s5185_s17, %s6370_s17   ;;  %v4150_v59 = vphi %v6191_v59, %v6369_v59   ;;  %v4146_v49 = vphi %v6190_v49, %v6368_v49   ;;  %v4142_v46 = vphi %v6189_v46, %v6367_v46   ;;  %v4138_v41 = vphi %v6188_v41, %v6366_v41   ;;  %v4134_v36 = vphi %v6187_v36, %v6365_v36   ;;  %v4130_v33 = vphi %v6186_v33, %v6364_v33   ;;  %v4126_v24 = vphi %v6185_v24, %v6363_v24   ;;  %v4122_v22 = vphi %v6184_v22, %v6362_v22   ;;  %v4118_v32 = vphi %v6183_v32, %v6361_v32   ;;  %v4114_v25 = vphi %v6182_v25, %v6360_v25   ;;  %v4110_v8 = vphi %v6181_v8, %v6359_v8   ;;  %v4106_v53 = vphi %v6180_v53, %v6358_v53   ;;  %v4102_v35 = vphi %v6179_v35, %v6357_v35   ;;  %v4098_v31 = vphi %v6178_v31, %v6356_v31   ;;  %v4094_v30 = vphi %v6177_v30, %v6355_v30   ;;  %v4090_v29 = vphi %v6176_v29, %v6354_v29   ;;  %v4086_v52 = vphi %v4940_v52, %v6353_v52   ;;  %v4082_v55 = vphi %v4944_v55, %v6352_v55   ;;  %v4078_v51 = vphi %v4938_v51, %v6351_v51   ;;  %v4074_v54 = vphi %v4942_v54, %v6350_v54   ;;  %v4070_v57 = vphi %v4948_v57, %v6349_v57   ;;  %v4066_v2 = vphi %v4958_v2, %v6348_v2   ;;  %v4062_v56 = vphi %v4946_v56, %v6347_v56   ;;  %v4058_v62 = vphi %v4954_v62, %v6346_v62   ;;  %v4054_v58 = vphi %v4952_v58, %v6345_v58   ;;  %v4050_v1 = vphi %v4964_v1, %v6344_v1   ;;  %v4046_v61 = vphi %v4950_v61, %v6343_v61   ;;  %v4042_v7 = vphi %v4962_v7, %v6342_v7   ;;  %v4038_v63 = vphi %v4956_v63, %v6341_v63   ;;  %v4034_v11 = vphi %v4966_v11, %v6340_v11   ;;  %v4030_v4 = vphi %v4960_v4, %v6339_v4   ;;  %v4026_v3 = vphi %v4968_v3, %v6338_v3   ;;  %v4022_v14 = vphi %v4970_v14, %v6337_v14   ;;  %v4018_v16 = vphi %v1307_v16, %v6336_v16   ;;  %v4014_v13 = vphi %v2437_v13, %v6335_v13   ;;  %v4010_v15 = vphi %v2438_v15, %v6334_v15   ;;  %v4006_v34 = vphi %v1320_v34, %v6333_v34   ;;  %v4002_v17 = vphi %v1323_v17, %v6332_v17   ;;  %v3998_v12 = vphi %v2441_v12, %v6331_v12   ;;  %v3994_v38 = vphi %v2442_v38, %v6330_v38   ;;  %v3990_v9 = vphi %v1336_v9, %v6329_v9   ;;  %v3974_v40 = vphi %v1352_v40, %v6325_v40   ;;  %v3970_v42 = vphi %v1355_v42, %v6324_v42   ;;  %v3966_v39 = vphi %v2449_v39, %v6323_v39   ;;  %v3962_v19 = vphi %v2450_v19, %v6322_v19  }
 0x45f   : >> { %6197 = vst [vmem:[#allocation36_spill] sm:$0xff] %v3970_v42  ;;  %6198 = vst [vmem:[#allocation37_spill] sm:$0xff] %v3974_v40  ;;  %v6199_v26 = vld [vmem:[#allocation31_spill] sm:$0xff]  ;;  %v6201_v18 = vld [vmem:[#allocation32_spill] sm:$0xff]  ;;  %2467 = vmatprep.mubr.msk.bf16.mxu0 %vm887_vm0, %v6216_v60  ;;  %s1423_s26 = scalar_lea.vmem [#allocation2], %s2321_s24  ;;  %s5371_s22 = scalar_lea.vmem [#allocation3], %s2321_s24 }
 0x460   : >> { %6200 = vst [vmem:[#allocation31_spill] sm:$0xff] %v6199_v26  ;;  %6202 = vst [vmem:[#allocation32_spill] sm:$0xff] %v6201_v18  ;;  %v6203_v28 = vld [vmem:[#allocation33_spill] sm:$0xff]  ;;  %v1424_v5 = vld [vmem:[%s1423_s26] sm:$0xff]  ;;  %p5713_p6 = scmp.ge.s32.totalorder %s1370_s25, %s3942_s12  ;;  %s6370_s17 = smov %s1370_s25 }
 0x461   : >> { %6204 = vst [vmem:[#allocation33_spill] sm:$0xff] %v6203_v28  ;;  %6205 = vst [vmem:[#allocation38_spill] sm:$0xff] %v3990_v9  ;;  %v1425_v10 = vld [vmem:[%s1423_s26 + $0x8] sm:$0xff]  ;;  %2571 = vmatprep.subr.msk.bf16.mxu0 %vm887_vm0, %v1424_v5  ;;  %v1433_v0 = vsel %vm887_vm0, %v1424_v5, 0  ;;  %v1426_v23 = vld [vmem:[%s1423_s26 + $0x10] sm:$0xff] }
 0x462   : >> { %6206 = vst [vmem:[#allocation39_spill] sm:$0xff] %v3994_v38  ;;  %6207 = vst [vmem:[#allocation40_spill] sm:$0xff] %v3998_v12  ;;  %2452 = vmatpush3.bf16.xpose.msra.mxu0 %v1433_v0  ;;  %v1436_v6 = vsel %vm887_vm0, %v1425_v10, 0  ;;  %v1439_v27 = vsel %vm887_vm0, %v1426_v23, 0  ;;  %v1427_v37 = vld [vmem:[%s1423_s26 + $0x18] sm:$0xff]  ;;  %v1428_v44 = vld [vmem:[%s1423_s26 + $0x20] sm:$0xff] }
 0x463   : >> { %6208 = vst [vmem:[#allocation41_spill] sm:$0xff] %v4002_v17  ;;  %6209 = vst [vmem:[#allocation42_spill] sm:$0xff] %v4006_v34  ;;  %2572 = vmatprep.subr.msk.bf16.mxu0 %vm887_vm0, %v1425_v10  ;;  %v1442_v43 = vsel %vm887_vm0, %v1427_v37, 0  ;;  %v1445_v20 = vsel %vm887_vm0, %v1428_v44, 0  ;;  %v1429_v45 = vld [vmem:[%s1423_s26 + $0x28] sm:$0xff]  ;;  %v1430_v47 = vld [vmem:[%s1423_s26 + $0x30] sm:$0xff] }
 0x464   : >> { %6210 = vst [vmem:[#allocation43_spill] sm:$0xff] %v4010_v15  ;;  %6211 = vst [vmem:[#allocation44_spill] sm:$0xff] %v4014_v13  ;;  %v1448_v48 = vsel %vm887_vm0, %v1429_v45, 0  ;;  %v1451_v21 = vsel %vm887_vm0, %v1430_v47, 0  ;;  %v1431_v50 = vld [vmem:[%s1423_s26 + $0x38] sm:$0xff]  ;;  %v6217_v5 = vld [vmem:[#allocation8_spill] sm:$0xff] }
 0x465   : >> { %6212 = vst [vmem:[#allocation45_spill] sm:$0xff] %v4018_v16  ;;  %6213 = vst [vmem:[#allocation46_spill] sm:$0xff] %v4022_v14  ;;  %v1454_v60 = vsel %vm887_vm0, %v1431_v50, 0  ;;  %v6218_v10 = vld [vmem:[#allocation9_spill] sm:$0xff]  ;;  %v6219_v0 = vld [vmem:[#allocation10_spill] sm:$0xff] }
 0x466   : >> { %6214 = vst [vmem:[#allocation47_spill] sm:$0xff] %v4026_v3  ;;  %6215 = vst [vmem:[#allocation48_spill] sm:$0xff] %v4030_v4  ;;  %v1791_v42 = vld [vmem:[%s5371_s22 + $0x20] sm:$0xff]  ;;  %v1793_v40 = vld [vmem:[%s5371_s22 + $0x30] sm:$0xff] }
 0x467   : >> { %v1794_v39 = vld [vmem:[%s5371_s22 + $0x38] sm:$0xff] }
 0x46a   : >> { %2454 = vmatpush3.bf16.xpose.msra.mxu0 %v1436_v6  ;;  %v6220_v6 = vld [vmem:[#allocation11_spill] sm:$0xff] }
 0x46b   : >> { %2573 = vmatprep.subr.msk.bf16.mxu0 %vm887_vm0, %v1426_v23  ;;  %v6221_v23 = vld [vmem:[#allocation12_spill] sm:$0xff] }
 0x472   : >> { %2456 = vmatpush3.bf16.xpose.msra.mxu0 %v1439_v27  ;;  %v6222_v27 = vld [vmem:[#allocation13_spill] sm:$0xff] }
 0x473   : >> { %2574 = vmatprep.subr.msk.bf16.mxu0 %vm887_vm0, %v1427_v37  ;;  %v6223_v37 = vld [vmem:[#allocation14_spill] sm:$0xff] }
 0x47a   : >> { %2458 = vmatpush3.bf16.xpose.msra.mxu0 %v1442_v43  ;;  %v1787_v43 = vld [vmem:[%s5371_s22] sm:$0xff] }
 0x47b   : >> { %2575 = vmatprep.subr.msk.bf16.mxu0 %vm887_vm0, %v1428_v44  ;;  %v1788_v44 = vld [vmem:[%s5371_s22 + $0x8] sm:$0xff]  ;;  %2483 = vmatprep.subr.bf16.mxu1 %v1787_v43 }
 0x47c   : >> { %2484 = vmatpush3.bf16.msra.mxu1 %v1787_v43 }
 0x47d   : >> { %2485 = vmatprep.subr.bf16.mxu1 %v1788_v44 }
 0x480   : >> { %2486 = vmatpush3.bf16.msra.mxu1 %v1788_v44 }
 0x482   : >> { %2460 = vmatpush3.bf16.xpose.msra.mxu0 %v1445_v20 }
 0x483   : >> { %2576 = vmatprep.subr.msk.bf16.mxu0 %vm887_vm0, %v1429_v45 }
 0x48a   : >> { %2462 = vmatpush3.bf16.xpose.msra.mxu0 %v1448_v48 }
 0x48b   : >> { %2577 = vmatprep.subr.msk.bf16.mxu0 %vm887_vm0, %v1430_v47 }
 0x492   : >> { %2464 = vmatpush3.bf16.xpose.msra.mxu0 %v1451_v21 }
 0x493   : >> { %2578 = vmatprep.subr.msk.bf16.mxu0 %vm887_vm0, %v1431_v50 }
 0x49a   : >> { %2466 = vmatpush3.bf16.xpose.msra.mxu0 %v1454_v60 }
 0x4a1   : >> { %2468 = vmatmul.mubr.msk.bf16.vlgmr.msra.gmra.mrb[0].mxu0 %vm887_vm0, %v6217_v5 }
 0x4a2   : >> { %2471 = vmatprep.mubr.msk.bf16.mxu0 %vm887_vm0, %v6218_v10 }
 0x4a9   : >> { %2472 = vmatmul.mubr.msk.bf16.gmra.mrb[4].mxu0 %vm887_vm0, %v6219_v0 }
 0x4aa   : >> { %2475 = vmatprep.mubr.msk.bf16.mxu0 %vm887_vm0, %v6220_v6  ;;  %v1789_v6 = vld [vmem:[%s5371_s22 + $0x10] sm:$0xff] }
 0x4ab   : >> { %2487 = vmatprep.subr.bf16.mxu1 %v1789_v6 }
 0x4ac   : >> { %2488 = vmatpush3.bf16.msra.mxu1 %v1789_v6 }
 0x4b1   : >> { %2476 = vmatmul.mubr.msk.bf16.gmra.mrb[8].mxu0 %vm887_vm0, %v6221_v23 }
 0x4b2   : >> { %2479 = vmatprep.mubr.msk.bf16.mxu0 %vm887_vm0, %v6222_v27 }
 0x4b9   : >> { %2480 = vmatmul.mubr.msk.bf16.gmra.mrb[12].mxu0 %vm887_vm0, %v6223_v37  ;;  %v1790_v37 = vld [vmem:[%s5371_s22 + $0x18] sm:$0xff] }
 0x4ba   : >> { %2489 = vmatprep.subr.bf16.mxu1 %v1790_v37 }
 0x4bb   : >> { %2490 = vmatpush3.bf16.msra.mxu1 %v1790_v37  ;;  %v1792_v37 = vld [vmem:[%s5371_s22 + $0x28] sm:$0xff] }
 0x4bc   : >> { %2491 = vmatprep.subr.bf16.mxu1 %v1791_v42 }
 0x4bf   : >> { %2492 = vmatpush3.bf16.msra.mxu1 %v1791_v42 }
 0x4c0   : >> { %2493 = vmatprep.subr.bf16.mxu1 %v1792_v37 }
 0x4c3   : >> { %2494 = vmatpush3.bf16.msra.mxu1 %v1792_v37 }
 0x4c4   : >> { %2495 = vmatprep.subr.bf16.mxu1 %v1793_v40 }
 0x4c7   : >> { %2496 = vmatpush3.bf16.msra.mxu1 %v1793_v40 }
 0x4c8   : >> { %2497 = vmatprep.subr.bf16.mxu1 %v1794_v39 }
 0x4cb   : >> { %2498 = vmatpush3.bf16.msra.mxu1 %v1794_v39 }
 0x574   : >> { %v2469_v20 = vpop.f32.mrb[0].mxu0 }
 0x575   : >> { %1557 = vmax.xlane.f32.xlu1 %v2469_v20  ;;  %v1490_v45 = vpop.f32.mrb[1].mxu0 }
 0x576   : >> { %1553 = vmax.xlane.f32.xlu0 %v1490_v45  ;;  %v5375_v48 = vpop.f32.mrb[2].mxu0 }
 0x577   : >> { %v5377_v47 = vpop.f32.mrb[3].mxu0 }
 0x579   : >> { %1559 = vmax.xlane.f32.xlu1 %v5375_v48 }
 0x57a   : >> { %1555 = vmax.xlane.f32.xlu0 %v5377_v47 }
 0x57c   : >> { %v5381_v21 = vpop.f32.mrb[4].mxu0 }
 0x57d   : >> { %v5383_v50 = vpop.f32.mrb[5].mxu0 }
 0x57e   : >> { %1561 = vmax.xlane.f32.xlu0 %v5383_v50  ;;  %v5386_v60 = vpop.f32.mrb[6].mxu0 }
 0x57f   : >> { %v5388_v5 = vpop.f32.mrb[7].mxu0 }
 0x580   : >> { %1563 = vmax.xlane.f32.xlu1 %v5388_v5 }
 0x582   : >> { %1565 = vmax.xlane.f32.xlu0 %v5381_v21 }
 0x584   : >> { %1567 = vmax.xlane.f32.xlu1 %v5386_v60  ;;  %v5393_v10 = vpop.f32.mrb[8].mxu0 }
 0x585   : >> { %v5395_v0 = vpop.f32.mrb[9].mxu0 }
 0x586   : >> { %1569 = vmax.xlane.f32.xlu0 %v5395_v0  ;;  %v5399_v23 = vpop.f32.mrb[10].mxu0 }
 0x587   : >> { %6224 = vst [vmem:[#allocation49_spill] sm:$0xff] %v5399_v23  ;;  %v5401_v27 = vpop.f32.mrb[11].mxu0 }
 0x588   : >> { %1571 = vmax.xlane.f32.xlu1 %v5401_v27 }
 0x58a   : >> { %1573 = vmax.xlane.f32.xlu0 %v5393_v10 }
 0x58c   : >> { %1575 = vmax.xlane.f32.xlu1 %v5399_v23  ;;  %v5407_v43 = vpop.f32.mrb[12].mxu0 }
 0x58d   : >> { %6225 = vst [vmem:[#allocation50_spill] sm:$0xff] %v5407_v43  ;;  %v5409_v44 = vpop.f32.mrb[13].mxu0 }
 0x58e   : >> { %6226 = vst [vmem:[#allocation51_spill] sm:$0xff] %v5409_v44  ;;  %1577 = vmax.xlane.f32.xlu0 %v5409_v44  ;;  %v5413_v6 = vpop.f32.mrb[14].mxu0 }
 0x58f   : >> { %6227 = vst [vmem:[#allocation52_spill] sm:$0xff] %v5413_v6  ;;  %v5415_v19 = vpop.f32.mrb[15].mxu0 }
 0x590   : >> { %1579 = vmax.xlane.f32.xlu1 %v5415_v19 }
 0x592   : >> { %1581 = vmax.xlane.f32.xlu0 %v5407_v43 }
 0x594   : >> { %1583 = vmax.xlane.f32.xlu1 %v5413_v6 }
 0x602   : >> { %v1558_v28 = vpop.xlane.xlu1 %1557 }
 0x603   : >> { %v5424_v26 = vmax.f32 %v4142_v46, %v1558_v28   ;;  %v1554_v42 = vpop.xlane.xlu0 %1553 }
 0x604   : >> { %v5427_v9 = vmax.f32 %v4150_v59, %v1554_v42  }
 0x605   : >> { %6228 = vst [vmem:[#allocation53_spill] sm:$0xff] %v5424_v26  ;;  %v6229_v44 = vmov %v5424_v26 }
 0x606   : >> { %6230 = vst [vmem:[#allocation54_spill] sm:$0xff] %v5427_v9  ;;  %v6231_v23 = vmov %v5427_v9  ;;  %v1651_v37 = vsub.f32 %v2469_v20, %v6229_v44  ;;  %v1560_v38 = vpop.xlane.xlu1 %1559 }
 0x607   : >> { %v1649_v40 = vsub.f32 %v1490_v45, %v6231_v23  ;;  %v5436_v34 = vmax.f32 %v4138_v41, %v1560_v38   ;;  %v1556_v26 = vpop.xlane.xlu0 %1555 }
 0x608   : >> { %v1669_v39 = vmul.f32 1.442695, %v1651_v37  ;;  %v5439_v28 = vmax.f32 %v4146_v49, %v1556_v26  }
 0x609   : >> { %6232 = vst [vmem:[#allocation55_spill] sm:$0xff] %v5436_v34  ;;  %v6233_v6 = vmov %v5436_v34  ;;  %v1665_v9 = vmul.f32 1.442695, %v1649_v40 }
 0x60a   : >> { %6234 = vst [vmem:[#allocation56_spill] sm:$0xff] %v5439_v28  ;;  %v6235_v43 = vmov %v5439_v28  ;;  %v1652_v20 = vsub.f32 %v5375_v48, %v6233_v6  ;;  %3442 = vpow2.f32 %v1669_v39 }
 0x60b   : >> { %v1650_v37 = vsub.f32 %v5377_v47, %v6235_v43  ;;  %v1562_v34 = vpop.xlane.xlu0 %1561  ;;  %3444 = vpow2.f32 %v1665_v9 }
 0x60c   : >> { %v1671_v38 = vmul.f32 1.442695, %v1652_v20  ;;  %v5450_v26 = vmax.f32 %v4134_v36, %v1562_v34  }
 0x60d   : >> { %v1667_v17 = vmul.f32 1.442695, %v1650_v37  ;;  %v1564_v40 = vpop.xlane.xlu1 %1563 }
 0x60e   : >> { %6236 = vst [vmem:[#allocation57_spill] sm:$0xff] %v5450_v26  ;;  %v6237_v18 = vmov %v5450_v26  ;;  %3446 = vpow2.f32 %v1671_v38  ;;  %v5457_v39 = vmax.f32 %v4130_v33, %v1564_v40  }
 0x60f   : >> { %v1653_v48 = vsub.f32 %v5383_v50, %v6237_v18  ;;  %v1566_v42 = vpop.xlane.xlu0 %1565  ;;  %3448 = vpow2.f32 %v1667_v17 }
 0x610   : >> { %6238 = vst [vmem:[#allocation58_spill] sm:$0xff] %v5457_v39  ;;  %v6239_v45 = vmov %v5457_v39  ;;  %v5464_v9 = vmax.f32 %v4126_v24, %v1566_v42  }
 0x611   : >> { %v1654_v20 = vsub.f32 %v5388_v5, %v6239_v45  ;;  %v1568_v38 = vpop.xlane.xlu1 %1567  ;;  %v1673_v34 = vmul.f32 1.442695, %v1653_v48 }
 0x612   : >> { %6240 = vst [vmem:[#allocation59_spill] sm:$0xff] %v5464_v9  ;;  %v6241_v37 = vmov %v5464_v9  ;;  %v5467_v26 = vmax.f32 %v4122_v22, %v1568_v38  }
 0x613   : >> { %v1675_v50 = vmul.f32 1.442695, %v1654_v20  ;;  %v1655_v17 = vsub.f32 %v5381_v21, %v6241_v37  ;;  %v1570_v39 = vpop.xlane.xlu0 %1569 }
 0x614   : >> { %6242 = vst [vmem:[#allocation60_spill] sm:$0xff] %v5467_v26  ;;  %v6243_v28 = vmov %v5467_v26  ;;  %v3443_v47 = vpop.eup %3442  ;;  %v5478_v48 = vmax.f32 %v4118_v32, %v1570_v39  }
 0x615   : >> { %v1656_v42 = vsub.f32 %v5386_v60, %v6243_v28  ;;  %3450 = vpow2.f32 %v1675_v50  ;;  %v1677_v9 = vmul.f32 1.442695, %v1655_v17  ;;  %1717 = vadd.xlane.f32.xlu0 %v3443_v47  ;;  %v1572_v20 = vpop.xlane.xlu1 %1571  ;;  %v3445_v40 = vpop.eup %3444 }
 0x616   : >> { %6244 = vst [vmem:[#allocation61_spill] sm:$0xff] %v5478_v48  ;;  %3452 = vpow2.f32 %v1673_v34  ;;  %v1657_v26 = vsub.f32 %v5395_v0, %v5478_v48  ;;  %v5485_v5 = vmax.f32 %v4114_v25, %v1572_v20  }
 0x617   : >> { %v1679_v38 = vmul.f32 1.442695, %v1656_v42  ;;  %v1574_v60 = vpop.xlane.xlu0 %1573  ;;  %3454 = vpow2.f32 %v1677_v9 }
 0x618   : >> { %6245 = vst [vmem:[#allocation62_spill] sm:$0xff] %v5485_v5  ;;  %v3447_v12 = vpop.eup %3446  ;;  %v5488_v50 = vmax.f32 %v4110_v8, %v1574_v60   ;;  %v1681_v17 = vmul.f32 1.442695, %v1657_v26  ;;  %v1658_v39 = vsub.f32 %v5401_v27, %v5485_v5 }
 0x619   : >> { %1713 = vadd.xlane.f32.xlu0 %v3445_v40  ;;  %1719 = vadd.xlane.f32.xlu1 %v3447_v12  ;;  %v1576_v0 = vpop.xlane.xlu1 %1575  ;;  %v1778_v42 = vpack.c.bf16 %v3447_v12, %v3443_v47  ;;  %v3449_v21 = vpop.eup %3448  ;;  %3456 = vpow2.f32 %v1679_v38  ;;  %v6249_v12 = vld [vmem:[#allocation49_spill] sm:$0xff] }
 0x61a   : >> { %6246 = vst [vmem:[#allocation63_spill] sm:$0xff] %v5488_v50  ;;  %v1659_v9 = vsub.f32 %v5393_v10, %v5488_v50  ;;  %v5499_v26 = vmax.f32 %v4106_v53, %v1576_v0   ;;  %v1683_v16 = vmul.f32 1.442695, %v1658_v39  ;;  %v1777_v15 = vpack.c.bf16 %v3449_v21, %v3445_v40 }
 0x61b   : >> { %v1578_v34 = vpop.xlane.xlu0 %1577  ;;  %3458 = vpow2.f32 %v1681_v17  ;;  %v6254_v17 = vld [vmem:[#allocation51_spill] sm:$0xff] }
 0x61c   : >> { %6247 = vst [vmem:[#allocation64_spill] sm:$0xff] %v5499_v26  ;;  %v6248_v60 = vmov %v5499_v26  ;;  %v1685_v14 = vmul.f32 1.442695, %v1659_v9  ;;  %v5506_v38 = vmax.f32 %v4102_v35, %v1578_v34   ;;  %2499 = vmatprep.mubr.bf16.mxu1 %v1777_v15  ;;  %3460 = vpow2.f32 %v1683_v16 }
 0x61d   : >> { %v1660_v47 = vsub.f32 %v6249_v12, %v6248_v60  ;;  %1715 = vadd.xlane.f32.xlu1 %v3449_v21  ;;  %v1580_v10 = vpop.xlane.xlu1 %1579  ;;  %2500 = vmatmul.mubr.bf16.vlgmr.msra.gmra.mrb[0].mxu1 %v1778_v42 }
 0x61e   : >> { %6250 = vst [vmem:[#allocation65_spill] sm:$0xff] %v5506_v38  ;;  %v6251_v20 = vmov %v5506_v38  ;;  %v5509_v39 = vmax.f32 %v4098_v31, %v1580_v10   ;;  %3462 = vpow2.f32 %v1685_v14  ;;  %v6256_v14 = vld [vmem:[#allocation50_spill] sm:$0xff] }
 0x61f   : >> { %v3451_v40 = vpop.eup %3450  ;;  %v1687_v9 = vmul.f32 1.442695, %v1660_v47  ;;  %v1661_v27 = vsub.f32 %v6254_v17, %v6251_v20  ;;  %v1582_v12 = vpop.xlane.xlu0 %1581 }
 0x620   : >> { %6252 = vst [vmem:[#allocation66_spill] sm:$0xff] %v5509_v39  ;;  %v6253_v0 = vmov %v5509_v39  ;;  %v3453_v13 = vpop.eup %3452  ;;  %v5520_v21 = vmax.f32 %v4094_v30, %v1582_v12  }
 0x621   : >> { %v1662_v16 = vsub.f32 %v5415_v19, %v6253_v0  ;;  %v1689_v34 = vmul.f32 1.442695, %v1661_v27  ;;  %v1584_v42 = vpop.xlane.xlu1 %1583  ;;  %v1779_v47 = vpack.c.bf16 %v3451_v40, %v3453_v13  ;;  %v3455_v38 = vpop.eup %3454  ;;  %3464 = vpow2.f32 %v1687_v9  ;;  %v6259_v9 = vld [vmem:[#allocation52_spill] sm:$0xff] }
 0x622   : >> { %6255 = vst [vmem:[#allocation67_spill] sm:$0xff] %v5520_v21  ;;  %v1663_v17 = vsub.f32 %v6256_v14, %v5520_v21  ;;  %v5527_v15 = vmax.f32 %v4090_v29, %v1584_v42   ;;  %1725 = vadd.xlane.f32.xlu0 %v3455_v38 }
 0x623   : >> { %v1691_v10 = vmul.f32 1.442695, %v1662_v16  ;;  %2503 = vmatprep.mubr.bf16.mxu1 %v1779_v47  ;;  %v3457_v19 = vpop.eup %3456  ;;  %3466 = vpow2.f32 %v1689_v34 }
 0x624   : >> { %6257 = vst [vmem:[#allocation68_spill] sm:$0xff] %v5527_v15  ;;  %v6258_v26 = vmov %v5527_v15  ;;  %v1693_v12 = vmul.f32 1.442695, %v1663_v17  ;;  %1727 = vadd.xlane.f32.xlu1 %v3457_v19  ;;  %v1780_v39 = vpack.c.bf16 %v3457_v19, %v3455_v38 }
 0x625   : >> { %v1664_v16 = vsub.f32 %v6259_v9, %v6258_v26  ;;  %3468 = vpow2.f32 %v1691_v10  ;;  %v3459_v3 = vpop.eup %3458 }
 0x626   : >> { %1721 = vadd.xlane.f32.xlu0 %v3453_v13  ;;  %v3461_v14 = vpop.eup %3460  ;;  %2504 = vmatmul.mubr.bf16.gmra.mrb[4].mxu1 %v1780_v39  ;;  %3470 = vpow2.f32 %v1693_v12  ;;  %v6262_v12 = vsub.f32 %v4138_v41, %v6233_v6 }
 0x627   : >> { %v1695_v4 = vmul.f32 1.442695, %v1664_v16  ;;  %v1781_v15 = vpack.c.bf16 %v3461_v14, %v3459_v3 }
 0x628   : >> { %1723 = vadd.xlane.f32.xlu1 %v3451_v40  ;;  %v3463_v42 = vpop.eup %3462  ;;  %v1623_v16 = vmul.f32 1.442695, %v6262_v12 }
 0x629   : >> { %3472 = vpow2.f32 %v1695_v4  ;;  %2507 = vmatprep.mubr.bf16.mxu1 %v1781_v15  ;;  %v6260_v4 = vsub.f32 %v4142_v46, %v6229_v44  ;;  %v6264_v46 = vsub.f32 %v4126_v24, %v6241_v37  ;;  %v6268_v24 = vsub.f32 %v4130_v33, %v6239_v45 }
 0x62a   : >> { %1733 = vadd.xlane.f32.xlu0 %v3463_v42  ;;  %v6272_v33 = vsub.f32 %v4106_v53, %v6248_v60 }
 0x62b   : >> { %v3465_v34 = vpop.eup %3464  ;;  %v1621_v39 = vmul.f32 1.442695, %v6260_v4 }
 0x62c   : >> { %1735 = vadd.xlane.f32.xlu1 %v3465_v34  ;;  %v1782_v47 = vpack.c.bf16 %v3465_v34, %v3463_v42  ;;  %v1629_v34 = vmul.f32 1.442695, %v6264_v46  ;;  %v6276_v46 = vsub.f32 %v4102_v35, %v6251_v20  ;;  %v6279_v35 = vsub.f32 %v4094_v30, %v5520_v21 }
 0x62d   : >> { %v3467_v17 = vpop.eup %3466  ;;  %3474 = vpow2.f32 %v1621_v39 }
 0x62e   : >> { %1729 = vadd.xlane.f32.xlu0 %v3459_v3  ;;  %2508 = vmatmul.mubr.bf16.gmra.mrb[8].mxu1 %v1782_v47  ;;  %v6261_v3 = vsub.f32 %v4150_v59, %v6231_v23  ;;  %v6265_v59 = vsub.f32 %v4122_v22, %v6243_v28  ;;  %v1627_v22 = vmul.f32 1.442695, %v6268_v24 }
 0x62f   : >> { %v3469_v9 = vpop.eup %3468 }
 0x630   : >> { %1731 = vadd.xlane.f32.xlu1 %v3461_v14  ;;  %v1783_v38 = vpack.c.bf16 %v3469_v9, %v3467_v17  ;;  %v3471_v10 = vpop.eup %3470  ;;  %v1617_v19 = vmul.f32 1.442695, %v6261_v3  ;;  %v6263_v14 = vsub.f32 %v4146_v49, %v6235_v43  ;;  %v1631_v47 = vmul.f32 1.442695, %v6265_v59 }
 0x631   : >> { %v6266_v49 = vsub.f32 %v4134_v36, %v6237_v18  ;;  %v6269_v36 = vsub.f32 %v4110_v8, %v5488_v50 }
 0x632   : >> { %1737 = vadd.xlane.f32.xlu0 %v3467_v17  ;;  %2511 = vmatprep.mubr.bf16.mxu1 %v1783_v38  ;;  %3476 = vpow2.f32 %v1617_v19  ;;  %v1619_v15 = vmul.f32 1.442695, %v6263_v14  ;;  %v1639_v19 = vmul.f32 1.442695, %v6272_v33 }
 0x633   : >> { %v3473_v13 = vpop.eup %3472  ;;  %3478 = vpow2.f32 %v1623_v16  ;;  %v1625_v38 = vmul.f32 1.442695, %v6266_v49  ;;  %v1637_v39 = vmul.f32 1.442695, %v6269_v36  ;;  %v6273_v16 = vsub.f32 %v4118_v32, %v5478_v48 }
 0x634   : >> { %1739 = vadd.xlane.f32.xlu1 %v3469_v9  ;;  %v1784_v40 = vpack.c.bf16 %v3473_v13, %v3471_v10  ;;  %3480 = vpow2.f32 %v1619_v15 }
 0x635   : >> { %3482 = vpow2.f32 %v1629_v34  ;;  %v1633_v14 = vmul.f32 1.442695, %v6273_v16  ;;  %v1641_v34 = vmul.f32 1.442695, %v6276_v46 }
 0x636   : >> { %1741 = vadd.xlane.f32.xlu0 %v3471_v10  ;;  %2512 = vmatmul.mubr.bf16.gmra.mrb[12].mxu1 %v1784_v40  ;;  %3484 = vpow2.f32 %v1631_v47 }
 0x637   : >> { %v5545_v42 = vpop.eup %3474  ;;  %3486 = vpow2.f32 %v1625_v38  ;;  %v1645_v38 = vmul.f32 1.442695, %v6279_v35 }
 0x638   : >> { %1743 = vadd.xlane.f32.xlu1 %v3473_v13  ;;  %v1699_v41 = vmul.f32 %v4078_v51, %v5545_v42  ;;  %3488 = vpow2.f32 %v1627_v22 }
 0x639   : >> { %3490 = vpow2.f32 %v1637_v39 }
 0x63a   : >> { %3492 = vpow2.f32 %v1639_v19 }
 0x63b   : >> { %3494 = vpow2.f32 %v1633_v14 }
 0x63c   : >> { %v5553_v17 = vpop.eup %3476 }
 0x63d   : >> { %v5557_v9 = vpop.eup %3478  ;;  %v1697_v13 = vmul.f32 %v4086_v52, %v5553_v17 }
 0x63e   : >> { %v1700_v40 = vmul.f32 %v4074_v54, %v5557_v9  ;;  %v5571_v4 = vpop.eup %3480 }
 0x63f   : >> { %v1698_v12 = vmul.f32 %v4082_v55, %v5571_v4  ;;  %v5590_v15 = vpop.eup %3482 }
 0x640   : >> { %v5595_v53 = vpop.eup %3484  ;;  %v1703_v32 = vmul.f32 %v4062_v56, %v5590_v15 }
 0x641   : >> { %v5602_v59 = vpop.eup %3486 }
 0x642   : >> { %v5611_v49 = vpop.eup %3488 }
 0x643   : >> { %v5620_v22 = vpop.eup %3490  ;;  %v1702_v30 = vmul.f32 %v4066_v2, %v5611_v49 }
 0x644   : >> { %v5629_v36 = vpop.eup %3492  ;;  %v1707_v39 = vmul.f32 %v4046_v61, %v5620_v22 }
 0x6a2   : >> { %v1718_v10 = vpop.xlane.xlu0 %1717 }
 0x6a3   : >> { %v5562_v51 = vadd.f32 %v1718_v10, %v1699_v41   ;;  %v1704_v41 = vmul.f32 %v4058_v62, %v5595_v53 }
 0x6a5   : >> { %6267 = vst [vmem:[#allocation69_spill] sm:$0xff] %v5562_v51 }
 0x6a6   : >> { %v1714_v3 = vpop.xlane.xlu0 %1713  ;;  %v1720_v51 = vpop.xlane.xlu1 %1719 }
 0x6a7   : >> { %v5576_v52 = vadd.f32 %v1714_v3, %v1697_v13   ;;  %v5578_v54 = vadd.f32 %v1720_v51, %v1700_v40   ;;  %v3495_v3 = vpop.eup %3494 }
 0x6a8   : >> { %v1705_v19 = vmul.f32 %v4054_v58, %v3495_v3 }
 0x6a9   : >> { %6270 = vst [vmem:[#allocation70_spill] sm:$0xff] %v5576_v52  ;;  %6271 = vst [vmem:[#allocation71_spill] sm:$0xff] %v5578_v54  ;;  %v6275_v52 = vsub.f32 %v4114_v25, %v5485_v5 }
 0x6aa   : >> { %v1716_v8 = vpop.xlane.xlu1 %1715 }
 0x6ab   : >> { %v5588_v55 = vadd.f32 %v1716_v8, %v1698_v12   ;;  %v1635_v54 = vmul.f32 1.442695, %v6275_v52 }
 0x6ad   : >> { %6274 = vst [vmem:[#allocation72_spill] sm:$0xff] %v5588_v55  ;;  %3496 = vpow2.f32 %v1635_v54  ;;  %v6277_v55 = vsub.f32 %v4098_v31, %v6253_v0  ;;  %v1701_v31 = vmul.f32 %v4070_v57, %v5602_v59 }
 0x6ae   : >> { %3498 = vpow2.f32 %v1641_v34 }
 0x6af   : >> { %v1643_v47 = vmul.f32 1.442695, %v6277_v55  ;;  %v1726_v25 = vpop.xlane.xlu0 %1725 }
 0x6b0   : >> { %v5607_v56 = vadd.f32 %v1726_v25, %v1703_v32   ;;  %v6290_v32 = vld [vmem:[#allocation48_spill] sm:$0xff]  ;;  %v6292_v25 = vld [vmem:[#allocation47_spill] sm:$0xff] }
 0x6b1   : >> { %v1728_v24 = vpop.xlane.xlu1 %1727  ;;  %3500 = vpow2.f32 %v1643_v47 }
 0x6b2   : >> { %6278 = vst [vmem:[#allocation73_spill] sm:$0xff] %v5607_v56  ;;  %v5616_v62 = vadd.f32 %v1728_v24, %v1704_v41   ;;  %v6281_v56 = vsub.f32 %v4090_v29, %v6258_v26  ;;  %3502 = vpow2.f32 %v1645_v38  ;;  %v6294_v38 = vld [vmem:[#allocation44_spill] sm:$0xff] }
 0x6b3   : >> { %v1722_v40 = vpop.xlane.xlu0 %1721  ;;  %v1763_v24 = vmul.f32 %v6294_v38, %v5545_v42  ;;  %v6302_v42 = vld [vmem:[#allocation40_spill] sm:$0xff] }
 0x6b4   : >> { %6280 = vst [vmem:[#allocation74_spill] sm:$0xff] %v5616_v62  ;;  %v1647_v13 = vmul.f32 1.442695, %v6281_v56  ;;  %v5625_v57 = vadd.f32 %v1722_v40, %v1701_v31   ;;  %v6295_v31 = vld [vmem:[#allocation46_spill] sm:$0xff]  ;;  %v6297_v40 = vld [vmem:[#allocation43_spill] sm:$0xff] }
 0x6b5   : >> { %v1724_v62 = vpop.xlane.xlu1 %1723  ;;  %v1761_v56 = vmul.f32 %v6295_v31, %v5553_v17  ;;  %v1767_v17 = vmul.f32 %v6302_v42, %v5590_v15  ;;  %v6310_v15 = vld [vmem:[#allocation32_spill] sm:$0xff] }
 0x6b6   : >> { %6282 = vst [vmem:[#allocation75_spill] sm:$0xff] %v5625_v57  ;;  %v5631_v2 = vadd.f32 %v1724_v62, %v1702_v30   ;;  %3504 = vpow2.f32 %v1647_v13  ;;  %v1708_v57 = vmul.f32 %v4042_v7, %v5629_v36  ;;  %v1764_v30 = vmul.f32 %v6297_v40, %v5557_v9 }
 0x6b7   : >> { %v1734_v51 = vpop.xlane.xlu0 %1733  ;;  %v3497_v29 = vpop.eup %3496 }
 0x6b8   : >> { %6283 = vst [vmem:[#allocation76_spill] sm:$0xff] %v5631_v2  ;;  %v5635_v61 = vadd.f32 %v1734_v51, %v1707_v39   ;;  %v3499_v12 = vpop.eup %3498  ;;  %v1706_v2 = vmul.f32 %v4050_v1, %v3497_v29  ;;  %v6299_v51 = vld [vmem:[#allocation45_spill] sm:$0xff] }
 0x6b9   : >> { %v1736_v33 = vpop.xlane.xlu1 %1735 }
 0x6ba   : >> { %6284 = vst [vmem:[#allocation77_spill] sm:$0xff] %v5635_v61  ;;  %v5639_v7 = vadd.f32 %v1736_v33, %v1708_v57   ;;  %v1709_v61 = vmul.f32 %v4038_v63, %v3499_v12  ;;  %v1762_v57 = vmul.f32 %v6299_v51, %v5571_v4 }
 0x6bb   : >> { %v1730_v16 = vpop.xlane.xlu0 %1729  ;;  %v3501_v14 = vpop.eup %3500 }
 0x6bc   : >> { %6285 = vst [vmem:[#allocation78_spill] sm:$0xff] %v5639_v7  ;;  %v5642_v58 = vadd.f32 %v1730_v16, %v1705_v19   ;;  %v3503_v52 = vpop.eup %3502  ;;  %v1710_v7 = vmul.f32 %v4034_v11, %v3501_v14 }
 0x6bd   : >> { %v1732_v8 = vpop.xlane.xlu1 %1731 }
 0x6be   : >> { %6286 = vst [vmem:[#allocation79_spill] sm:$0xff] %v5642_v58  ;;  %v5645_v1 = vadd.f32 %v1732_v8, %v1706_v2   ;;  %v1711_v58 = vmul.f32 %v6290_v32, %v3503_v52  ;;  %v6307_v32 = vld [vmem:[#allocation41_spill] sm:$0xff] }
 0x6bf   : >> { %v1738_v54 = vpop.xlane.xlu0 %1737 }
 0x6c0   : >> { %6287 = vst [vmem:[#allocation80_spill] sm:$0xff] %v5645_v1  ;;  %v5648_v63 = vadd.f32 %v1738_v54, %v1709_v61   ;;  %v3505_v46 = vpop.eup %3504  ;;  %v6305_v54 = vld [vmem:[#allocation39_spill] sm:$0xff] }
 0x6c1   : >> { %v1740_v34 = vpop.xlane.xlu1 %1739  ;;  %v1712_v41 = vmul.f32 %v6292_v25, %v3505_v46 }
 0x6c2   : >> { %6288 = vst [vmem:[#allocation81_spill] sm:$0xff] %v5648_v63  ;;  %v5651_v11 = vadd.f32 %v1740_v34, %v1710_v7   ;;  %v1768_v7 = vmul.f32 %v6305_v54, %v5595_v53  ;;  %v6350_v54 = vld [vmem:[#allocation71_spill] sm:$0xff] }
 0x6c3   : >> { %v1742_v55 = vpop.xlane.xlu0 %1741 }
 0x6c4   : >> { %v6289_v27 = vmov %v5651_v11  ;;  %v5654_v47 = vadd.f32 %v1742_v55, %v1711_v58   ;;  %v1766_v58 = vmul.f32 %v6307_v32, %v5611_v49  ;;  %v6361_v32 = vld [vmem:[#allocation61_spill] sm:$0xff] }
 0x6c5   : >> { %v1744_v1 = vpop.xlane.xlu1 %1743 }
 0x6c6   : >> { %v6291_v23 = vmov %v5654_v47  ;;  %v5657_v35 = vadd.f32 %v1744_v1, %v1712_v41   ;;  %v6311_v47 = vld [vmem:[#allocation38_spill] sm:$0xff]  ;;  %v6314_v1 = vld [vmem:[#allocation33_spill] sm:$0xff] }
 0x6c7   : >> { %v1769_v25 = vmul.f32 %v6311_v47, %v3495_v3  ;;  %v6318_v3 = vld [vmem:[#allocation37_spill] sm:$0xff] }
 0x6c8   : >> { %v6293_v28 = vmov %v5657_v35  ;;  %v1770_v35 = vmul.f32 %v6314_v1, %v3497_v29  ;;  %v6344_v1 = vld [vmem:[#allocation80_spill] sm:$0xff] }
 0x6f0   : >> { %v2501_v63 = vpop.f32.mrb[0].mxu1 }
 0x6f1   : >> { %v5663_v13 = vadd.f32 %v2501_v63, %v1763_v24   ;;  %v1829_v11 = vpop.f32.mrb[1].mxu1 }
 0x6f2   : >> { %v5667_v62 = vadd.f32 %v1829_v11, %v1761_v56   ;;  %v2502_v39 = vpop.f32.mrb[2].mxu1  ;;  %v1773_v11 = vmul.f32 %v6318_v3, %v3499_v12  ;;  %v6338_v3 = vmov %v6293_v28 }
 0x6f3   : >> { %v6296_v5 = vmov %v5663_v13  ;;  %v5671_v33 = vadd.f32 %v2502_v39, %v1764_v30   ;;  %v1832_v19 = vpop.f32.mrb[3].mxu1  ;;  %v6303_v13 = vld [vmem:[#allocation42_spill] sm:$0xff]  ;;  %v6320_v39 = vld [vmem:[#allocation36_spill] sm:$0xff] }
 0x6f4   : >> { %v6298_v10 = vmov %v5667_v62  ;;  %v5673_v16 = vadd.f32 %v1832_v19, %v1762_v57   ;;  %v1765_v8 = vmul.f32 %v6303_v13, %v5602_v59  ;;  %v1771_v59 = vmul.f32 %v6310_v15, %v5620_v22  ;;  %v6317_v22 = vld [vmem:[#allocation35_spill] sm:$0xff]  ;;  %v6319_v30 = vld [vmem:[#allocation34_spill] sm:$0xff] }
 0x6f5   : >> { %v6300_v6 = vmov %v5671_v33  ;;  %v1775_v31 = vmul.f32 %v6317_v22, %v3503_v52  ;;  %v1776_v62 = vmul.f32 %v6319_v30, %v3505_v46  ;;  %v1774_v51 = vmul.f32 %v6320_v39, %v3501_v14  ;;  %v6349_v57 = vld [vmem:[#allocation75_spill] sm:$0xff]  ;;  %v6353_v52 = vld [vmem:[#allocation70_spill] sm:$0xff]  ;;  %v6362_v22 = vld [vmem:[#allocation60_spill] sm:$0xff] }
 0x6f6   : >> { %v6301_v26 = vmov %v5673_v16  ;;  %v6334_v15 = vmov %v6300_v6  ;;  %v6335_v13 = vmov %v6296_v5  ;;  %v6337_v14 = vmov %v6298_v10  ;;  %v6355_v30 = vld [vmem:[#allocation67_spill] sm:$0xff]  ;;  %v6364_v33 = vld [vmem:[#allocation58_spill] sm:$0xff]  ;;  %v6367_v46 = vld [vmem:[#allocation53_spill] sm:$0xff] }
 0x6f7   : > { %v6377_v30 = vmov (%p5713_p6), %v6301_v26  ;;  %v6380_v33 = vmov (%p5713_p6), %v6291_v23  ;;  %v6381_v22 = vmov (%p5713_p6), %v6289_v27  ;;  %v6384_v46 = vld [vmem:[#allocation77_spill] sm:$0xff] (%p5713_p6) }
 0x6f9   : >> { %v2505_v2 = vpop.f32.mrb[4].mxu1 }
 0x6fa   : >> { %v5679_v61 = vadd.f32 %v2505_v2, %v1767_v17   ;;  %v1845_v9 = vpop.f32.mrb[5].mxu1  ;;  %v6348_v2 = vld [vmem:[#allocation76_spill] sm:$0xff] }
 0x6fb   : >> { %v5683_v34 = vadd.f32 %v1845_v9, %v1765_v8   ;;  %v2506_v4 = vpop.f32.mrb[6].mxu1  ;;  %v6359_v8 = vld [vmem:[#allocation63_spill] sm:$0xff] }
 0x6fc   : >> { %v6304_v18 = vmov %v5679_v61  ;;  %v5687_v38 = vadd.f32 %v2506_v4, %v1768_v7   ;;  %v1848_v16 = vpop.f32.mrb[7].mxu1  ;;  %v6339_v4 = vmov %v6291_v23  ;;  %v6342_v7 = vld [vmem:[#allocation78_spill] sm:$0xff]  ;;  %v6343_v61 = vld [vmem:[#allocation77_spill] sm:$0xff] }
 0x6fd   : >> { %v6306_v60 = vmov %v5683_v34  ;;  %v5689_v17 = vadd.f32 %v1848_v16, %v1766_v58   ;;  %v6312_v34 = vld [vmem:[#allocation31_spill] sm:$0xff]  ;;  %v6331_v12 = vmov %v6304_v18  ;;  %v6336_v16 = vmov %v6301_v26  ;;  %v6345_v58 = vld [vmem:[#allocation79_spill] sm:$0xff]  ;;  %v6392_v23 = vld [vmem:[#allocation69_spill] sm:$0xff] (%p5713_p6) }
 0x6fe   : >> { %v6308_v0 = vmov %v5687_v38  ;;  %v1772_v41 = vmul.f32 %v6312_v34, %v5629_v36  ;;  %v6333_v34 = vmov %v6306_v60 }
 0x6ff   : >> { %v6309_v37 = vmov %v5689_v17  ;;  %v6371_v32 = vmov (%p5713_p6), %v6308_v0 }
 0x700   : >> { %v6332_v17 = vmov %v6309_v37  ;;  %v6373_v8 = vmov (%p5713_p6), %v6309_v37  ;;  %v6394_v37 = vld [vmem:[#allocation70_spill] sm:$0xff] (%p5713_p6) }
 0x701   : >> { %v2509_v55 = vpop.f32.mrb[8].mxu1 }
 0x702   : >> { %v5694_v47 = vadd.f32 %v2509_v55, %v1771_v59   ;;  %v1861_v53 = vpop.f32.mrb[9].mxu1  ;;  %v6352_v55 = vld [vmem:[#allocation72_spill] sm:$0xff]  ;;  %v6369_v59 = vld [vmem:[#allocation54_spill] sm:$0xff] }
 0x703   : >> { %v5698_v9 = vadd.f32 %v1861_v53, %v1769_v25   ;;  %v2510_v49 = vpop.f32.mrb[10].mxu1  ;;  %v6358_v53 = vld [vmem:[#allocation64_spill] sm:$0xff]  ;;  %v6360_v25 = vld [vmem:[#allocation62_spill] sm:$0xff] }
 0x704   : >> { %v5701_v38 = vadd.f32 %v2510_v49, %v1772_v41   ;;  %v1864_v24 = vpop.f32.mrb[11].mxu1  ;;  %6327 = vst [vmem:[#allocation32_spill] sm:$0xff] %v5694_v47  ;;  %v6366_v41 = vld [vmem:[#allocation55_spill] sm:$0xff]  ;;  %v6368_v49 = vld [vmem:[#allocation56_spill] sm:$0xff]  ;;  %v6372_v25 = vmov (%p5713_p6), %v6304_v18  ;;  %v6374_v53 = vmov (%p5713_p6), %v6306_v60  ;;  %v6387_v60 = vld [vmem:[#allocation74_spill] sm:$0xff] (%p5713_p6) }
 0x705   : >> { %v6313_v50 = vmov %v5698_v9  ;;  %v5703_v63 = vadd.f32 %v1864_v24, %v1770_v35   ;;  %v6357_v35 = vld [vmem:[#allocation65_spill] sm:$0xff]  ;;  %v6363_v24 = vld [vmem:[#allocation59_spill] sm:$0xff]  ;;  %v6383_v49 = vld [vmem:[#allocation78_spill] sm:$0xff] (%p5713_p6) }
 0x706   : >> { %v6315_v48 = vmov %v5701_v38  ;;  %v6329_v9 = vmov %v6313_v50  ;;  %v6330_v38 = vmov %v6308_v0  ;;  %v6375_v35 = vmov (%p5713_p6), %v6300_v6  ;;  %v6385_v41 = vld [vmem:[#allocation80_spill] sm:$0xff] (%p5713_p6)  ;;  %v6386_v0 = vld [vmem:[#allocation79_spill] sm:$0xff] (%p5713_p6) }
 0x707   : >> { %v6316_v21 = vmov %v5703_v63  ;;  %6326 = vst [vmem:[#allocation31_spill] sm:$0xff] %v6315_v48  ;;  %v6341_v63 = vld [vmem:[#allocation81_spill] sm:$0xff]  ;;  %v6379_v24 = vmov (%p5713_p6), %v6293_v28  ;;  %v6389_v59 = vld [vmem:[#allocation76_spill] sm:$0xff] (%p5713_p6)  ;;  %v6391_v6 = vld [vmem:[#allocation71_spill] sm:$0xff] (%p5713_p6) }
 0x708   : >> { %6328 = vst [vmem:[#allocation33_spill] sm:$0xff] %v6316_v21 }
 0x709   : >> { %v2513_v56 = vpop.f32.mrb[12].mxu1 }
 0x70a   : >> { %v1906_v44 = vadd.f32 %v2513_v56, %v1775_v31   ;;  %v1877_v40 = vpop.f32.mrb[13].mxu1  ;;  %v6347_v56 = vld [vmem:[#allocation73_spill] sm:$0xff]  ;;  %v6356_v31 = vld [vmem:[#allocation66_spill] sm:$0xff] }
 0x70b   : >> { %v1904_v45 = vadd.f32 %v1877_v40, %v1773_v11   ;;  %v2514_v36 = vpop.f32.mrb[14].mxu1  ;;  %v6340_v11 = vmov %v6289_v27  ;;  %1372 = sbr.rel (!%p5713_p6) target bundleno = 1118 (0x45e), region = 79  ;;  %v6376_v31 = vmov (%p5713_p6), %v6296_v5  ;;  %v6390_v5 = vld [vmem:[#allocation75_spill] sm:$0xff] (%p5713_p6)  ;;  %v6393_v27 = vld [vmem:[#allocation72_spill] sm:$0xff] (%p5713_p6) }
 0x70c   : >> { %v1907_v43 = vadd.f32 %v2514_v36, %v1776_v62   ;;  %v1880_v29 = vpop.f32.mrb[15].mxu1  ;;  %v6323_v39 = vmov %v1906_v44  ;;  %v6346_v62 = vld [vmem:[#allocation74_spill] sm:$0xff]  ;;  %v6365_v36 = vld [vmem:[#allocation57_spill] sm:$0xff] }
 0x70d   : >> { %v1905_v20 = vadd.f32 %v1880_v29, %v1774_v51   ;;  %v6325_v40 = vmov %v1904_v45  ;;  %v6351_v51 = vld [vmem:[#allocation69_spill] sm:$0xff]  ;;  %v6354_v29 = vld [vmem:[#allocation68_spill] sm:$0xff] }
 0x70e   : >> { %v6322_v19 = vmov %v1907_v43  ;;  %v6378_v29 = vmov (%p5713_p6), %v6298_v10  ;;  %v6382_v36 = vld [vmem:[#allocation81_spill] sm:$0xff] (%p5713_p6) }
 0x70f   : >> { %v6324_v42 = vmov %v1905_v20  ;;  %v6388_v10 = vld [vmem:[#allocation73_spill] sm:$0xff] (%p5713_p6) }
 0x712 PF: > { %3506 = vrcp.f32 %v4282_v37  ;;  %v4282_v37 = vphi %v6172_v37, %v6394_v37   ;;  %v4278_v27 = vphi %v6171_v27, %v6393_v27   ;;  %v4274_v23 = vphi %v6170_v23, %v6392_v23   ;;  %v4270_v6 = vphi %v6169_v6, %v6391_v6   ;;  %v4266_v5 = vphi %v6168_v5, %v6390_v5   ;;  %v4262_v59 = vphi %v6167_v59, %v6389_v59   ;;  %v4258_v10 = vphi %v6166_v10, %v6388_v10   ;;  %v4254_v60 = vphi %v6165_v60, %v6387_v60   ;;  %v4250_v0 = vphi %v6164_v0, %v6386_v0   ;;  %v4246_v41 = vphi %v6163_v41, %v6385_v41   ;;  %v4242_v46 = vphi %v6162_v46, %v6384_v46   ;;  %v4238_v49 = vphi %v6161_v49, %v6383_v49   ;;  %v4234_v36 = vphi %v6160_v36, %v6382_v36   ;;  %v4230_v22 = vphi %v6159_v22, %v6381_v22   ;;  %v4226_v33 = vphi %v6158_v33, %v6380_v33   ;;  %v4222_v24 = vphi %v6157_v24, %v6379_v24   ;;  %v4218_v29 = vphi %v6156_v29, %v6378_v29   ;;  %v4214_v30 = vphi %v6155_v30, %v6377_v30   ;;  %v4210_v31 = vphi %v6154_v31, %v6376_v31   ;;  %v4206_v35 = vphi %v6153_v35, %v6375_v35   ;;  %v4202_v53 = vphi %v6152_v53, %v6374_v53   ;;  %v4198_v8 = vphi %v6151_v8, %v6373_v8   ;;  %v4194_v25 = vphi %v6150_v25, %v6372_v25   ;;  %v4190_v32 = vphi %v6149_v32, %v6371_v32   ;;  %v4186_v50 = vphi %v6148_v50, %v6313_v50   ;;  %v4182_v21 = vphi %v6147_v21, %v6316_v21   ;;  %v4178_v47 = vphi %v6146_v47, %v5694_v47   ;;  %v4174_v48 = vphi %v6145_v48, %v6315_v48   ;;  %v4170_v45 = vphi %v6144_v45, %v1904_v45   ;;  %v4166_v20 = vphi %v6143_v20, %v1905_v20   ;;  %v4162_v44 = vphi %v6142_v44, %v1906_v44   ;;  %v4158_v43 = vphi %v6141_v43, %v1907_v43  }
 0x713   : > { %3508 = vrcp.f32 %v4278_v27 }
 0x714   : > { %3510 = vrcp.f32 %v4274_v23 }
 0x715   : > { %3512 = vrcp.f32 %v4270_v6 }
 0x716   : > { %3514 = vrcp.f32 %v4266_v5 }
 0x717   : > { %3516 = vrcp.f32 %v4262_v59 }
 0x718   : > { %3518 = vrcp.f32 %v4258_v10 }
 0x719   : > { %3520 = vrcp.f32 %v4254_v60 }
 0x71a   : > { %3522 = vrcp.f32 %v4250_v0 }
 0x71b   : > { %3524 = vrcp.f32 %v4246_v41 }
 0x71c   : > { %v3507_v18 = vpop.eup %3506  ;;  %3526 = vrcp.f32 %v4242_v46 }
 0x71d   : > { %v3509_v28 = vpop.eup %3508  ;;  %v1924_v26 = vmul.f32 %v4218_v29, %v3507_v18  ;;  %3528 = vrcp.f32 %v4238_v49 }
 0x71e   : > { %v3511_v12 = vpop.eup %3510  ;;  %v1925_v37 = vmul.f32 %v4214_v30, %v3509_v28  ;;  %3530 = vrcp.f32 %v4234_v36 }
 0x71f   : > { %v3513_v23 = vpop.eup %3512  ;;  %1940 = vst.msk [vmem:[%s4427_s29] sm:$0xff] %vm887_vm0, %v1924_v26  ;;  %v1926_v6 = vmul.f32 %v4210_v31, %v3511_v12  ;;  %3532 = vrcp.f32 %v4230_v22 }
 0x720   : > { %v3515_v5 = vpop.eup %3514  ;;  %1941 = vst.msk [vmem:[%s4427_s29 + $0x8] sm:$0xff] %vm887_vm0, %v1925_v37  ;;  %v1927_v60 = vmul.f32 %v4206_v35, %v3513_v23  ;;  %3534 = vrcp.f32 %v4226_v33 }
 0x721   : > { %v3517_v0 = vpop.eup %3516  ;;  %1942 = vst.msk [vmem:[%s4427_s29 + $0x10] sm:$0xff] %vm887_vm0, %v1926_v6  ;;  %v1928_v27 = vmul.f32 %v4202_v53, %v3515_v5  ;;  %3536 = vrcp.f32 %v4222_v24 }
 0x722   : > { %v3519_v10 = vpop.eup %3518  ;;  %1943 = vst.msk [vmem:[%s4427_s29 + $0x18] sm:$0xff] %vm887_vm0, %v1927_v60  ;;  %v1929_v14 = vmul.f32 %v4198_v8, %v3517_v0 }
 0x723   : > { %v3521_v52 = vpop.eup %3520  ;;  %1944 = vst.msk [vmem:[%s4427_s29 + $0x20] sm:$0xff] %vm887_vm0, %v1928_v27  ;;  %v1930_v46 = vmul.f32 %v4194_v25, %v3519_v10 }
 0x724   : > { %v3523_v57 = vpop.eup %3522  ;;  %1945 = vst.msk [vmem:[%s4427_s29 + $0x28] sm:$0xff] %vm887_vm0, %v1929_v14  ;;  %v1931_v33 = vmul.f32 %v4190_v32, %v3521_v52 }
 0x725   : > { %v3525_v19 = vpop.eup %3524  ;;  %1946 = vst.msk [vmem:[%s4427_s29 + $0x30] sm:$0xff] %vm887_vm0, %v1930_v46  ;;  %v1932_v42 = vmul.f32 %v4186_v50, %v3523_v57 }
 0x726   : > { %v3527_v17 = vpop.eup %3526  ;;  %1947 = vst.msk [vmem:[%s4427_s29 + $0x38] sm:$0xff] %vm887_vm0, %v1931_v33  ;;  %v1933_v2 = vmul.f32 %v4182_v21, %v3525_v19 }
 0x727   : > { %v3529_v13 = vpop.eup %3528  ;;  %1948 = vst.msk [vmem:[%s4427_s29 + $0x40] sm:$0xff] %vm887_vm0, %v1932_v42  ;;  %v1934_v8 = vmul.f32 %v4178_v47, %v3527_v17 }
 0x728   : > { %v3531_v61 = vpop.eup %3530  ;;  %1949 = vst.msk [vmem:[%s4427_s29 + $0x48] sm:$0xff] %vm887_vm0, %v1933_v2  ;;  %v1935_v9 = vmul.f32 %v4174_v48, %v3529_v13 }
 0x729   : > { %v3533_v50 = vpop.eup %3532  ;;  %1950 = vst.msk [vmem:[%s4427_s29 + $0x50] sm:$0xff] %vm887_vm0, %v1934_v8  ;;  %v1936_v54 = vmul.f32 %v4170_v45, %v3531_v61 }
 0x72a   : > { %v3535_v7 = vpop.eup %3534  ;;  %1951 = vst.msk [vmem:[%s4427_s29 + $0x58] sm:$0xff] %vm887_vm0, %v1935_v9  ;;  %v1937_v21 = vmul.f32 %v4166_v20, %v3533_v50 }
 0x72b   : > { %v3537_v4 = vpop.eup %3536  ;;  %1952 = vst.msk [vmem:[%s4427_s29 + $0x60] sm:$0xff] %vm887_vm0, %v1936_v54  ;;  %v1938_v32 = vmul.f32 %v4162_v44, %v3535_v7 }
 0x72c   : > { %1953 = vst.msk [vmem:[%s4427_s29 + $0x68] sm:$0xff] %vm887_vm0, %v1937_v21  ;;  %v1939_v58 = vmul.f32 %v4158_v43, %v3537_v4 }
 0x72d   : > { %1954 = vst.msk [vmem:[%s4427_s29 + $0x70] sm:$0xff] %vm887_vm0, %v1938_v32 }
 0x72e   : > { %1955 = vst.msk [vmem:[%s4427_s29 + $0x78] sm:$0xff] %vm887_vm0, %v1939_v58 }
 0x72f PF: > { %s15_s16 = sadd.s32 1, %s3958_s16   ;;  %s6395_s9 = smov %s3934_s10 }
 0x730   : > { %p12_p8 = scmp.ge.s32.totalorder %s15_s16, 6   ;;  %s6396_s10 = smov %s3938_s11 }
 0x731   : > { %s6397_s11 = smov %s4370_s28  ;;  %s6398_s12 = smov %s3950_s14 }
 0x732   : > { %s6399_s13 = smov %s3954_s15  ;;  %s6400_s14 = smov %s6403_s18 }
 0x733   : > { %s6401_s15 = smov %s6407_s19  ;;  %14 = sbr.rel (!%p12_p8) target bundleno = 5 (0x5), region = 90 }
 0x73a   :  { %1986 = vsyncpa [#allocation5], 1 }
 0x73b   :  { %1988 = vsyncpa [#allocation5 + $0x1], 1 }

</bundles_post_ra>
